<compile_context>
chip_gen: v7x
topology: tpu7x:2x2x1
jax: 0.10.0
libtpu: 0.0.40
codegen_flags: <defaults>
</compile_context>

<pallas_src>
import functools

import jax
import jax.numpy as jnp
from jax import lax
from jax.experimental import pallas as pl
from jax.experimental.pallas import tpu as pltpu


def _round_up(n, m):
    return ((n + m - 1) // m) * m


def _pad2d(a, rows, cols):
    r, c = a.shape
    if r == rows and c == cols:
        return a
    return jnp.zeros((rows, cols), a.dtype).at[:r, :c].set(a)


def mlp_kernel(x_ref, w1_ref, b1_ref, gamma_ref, beta_ref, w2h_ref, *rest,
               eps, dh_real, residual):
    if residual:
        w2x_ref, b2_ref, o_ref = rest
    else:
        b2_ref, o_ref = rest

    x = x_ref[...]                       # native dtype -> MXU operand (bf16 stays bf16)

    # layer1: Linear(input_dim -> hidden_dim); f32 accumulation on the MXU.
    h = jnp.dot(x, w1_ref[...], preferred_element_type=jnp.float32)
    h = h + b1_ref[...].astype(jnp.float32)

    # LayerNorm(hidden_dim) in f32.  Padded hidden columns are exactly zero
    # (zero-padded W1/b1), so statistics use only the real dh_real columns.
    dh_pad = h.shape[-1]
    if dh_pad == dh_real:
        mu = jnp.mean(h, axis=-1, keepdims=True)
        cent = h - mu
        var = jnp.mean(cent * cent, axis=-1, keepdims=True)
    else:
        inv_dh = 1.0 / dh_real
        mask = lax.broadcasted_iota(jnp.int32, (1, dh_pad), 1) < dh_real
        mu = jnp.sum(h, axis=-1, keepdims=True) * inv_dh
        cent = jnp.where(mask, h - mu, 0.0)
        var = jnp.sum(cent * cent, axis=-1, keepdims=True) * inv_dh
    hn = cent * lax.rsqrt(var + eps)
    hn = hn * gamma_ref[...].astype(jnp.float32) + beta_ref[...].astype(jnp.float32)

    # ReLU (padded hidden columns remain exactly 0: gamma/beta padding is 0).
    hn = jnp.maximum(hn, 0.0)

    # dropout1/dropout2 with p_drop=0.0 are identity (eval semantics).

    # layer2: Linear(layer2_dim -> output_dim).
    # torch.cat([h, x], -1) @ W2 == h @ W2h + x @ W2x -> two matmuls, no concat copy.
    hn = hn.astype(w2h_ref.dtype)
    out = jnp.dot(hn, w2h_ref[...], preferred_element_type=jnp.float32)
    if residual:
        out = out + jnp.dot(x.astype(w2x_ref.dtype), w2x_ref[...],
                            preferred_element_type=jnp.float32)
    out = out + b2_ref[...].astype(jnp.float32)
    o_ref[...] = out.astype(o_ref.dtype)


def _const_spec(shape, single_buffer):
    index_map = lambda i: (0,) * len(shape)
    if single_buffer:
        # Constant block -> one resident buffer is enough; halves weight VMEM use.
        return pl.BlockSpec(shape, index_map, pipeline_mode=pl.Buffered(1))
    return pl.BlockSpec(shape, index_map)


def _build_mlp_call(*, tb, b_pad, din_p, dh_p, dout_p, out_dtype, eps,
                    dh_real, residual, cost, vmem_limit, single_buffer_weights):
    kernel = functools.partial(mlp_kernel, eps=eps, dh_real=dh_real,
                               residual=residual)
    sb = single_buffer_weights
    in_specs = [
        pl.BlockSpec((tb, din_p), lambda i: (i, 0)),   # x tile (pipelined per grid step)
        _const_spec((din_p, dh_p), sb),                # W1
        _const_spec((1, dh_p), sb),                    # b1
        _const_spec((1, dh_p), sb),                    # LayerNorm gamma
        _const_spec((1, dh_p), sb),                    # LayerNorm beta
        _const_spec((dh_p, dout_p), sb),               # W2 (hidden part)
    ]
    if residual:
        in_specs.append(_const_spec((din_p, dout_p), sb))   # W2 (residual-x part)
    in_specs.append(_const_spec((1, dout_p), sb))            # b2

    return pl.pallas_call(
        kernel,
        out_shape=jax.ShapeDtypeStruct((b_pad, dout_p), out_dtype),
        grid_spec=pltpu.PrefetchScalarGridSpec(
            num_scalar_prefetch=0,
            grid=(b_pad // tb,),
            in_specs=in_specs,
            out_specs=pl.BlockSpec((tb, dout_p), lambda i: (i, 0)),
        ),
        compiler_params=pltpu.CompilerParams(
            dimension_semantics=("parallel",),
            vmem_limit_bytes=vmem_limit,
        ),
        cost_estimate=cost,
    )


def mlp_forward(x, params, *, residual, eps=1e-5, tb=None):
    B, Din = x.shape
    Dh = params["w1"].shape[1]
    Dout = params["b2"].shape[-1]

    # Lane-align all feature dims to 128 (MXU width / lane-dense output stores).
    Din_p, Dh_p, Dout_p = (_round_up(d, 128) for d in (Din, Dh, Dout))

    # Batch tile: multiple of 8 sublanes, capped at 256 rows, aiming for several
    # grid steps when the batch allows it (pipelining + v7x megacore sharding).
    if tb is None:
        tb = min(256, max(8, _round_up(B // 8, 8)))
    tb = max(8, _round_up(tb, 8))
    B_p = _round_up(B, tb)

    x_p = jnp.zeros((B_p, Din_p), x.dtype).at[:B, :Din].set(x)
    w1_p = _pad2d(params["w1"], Din_p, Dh_p)
    b1_p = _pad2d(params["b1"], 1, Dh_p)
    gamma_p = _pad2d(params["gamma"], 1, Dh_p)
    beta_p = _pad2d(params["beta"], 1, Dh_p)
    w2h_p = _pad2d(params["w2h"], Dh_p, Dout_p)
    b2_p = _pad2d(params["b2"], 1, Dout_p)
    w2x_p = _pad2d(params["w2x"], Din_p, Dout_p) if residual else None

    itemsize = jnp.dtype(x.dtype).itemsize
    k2_real = Dh + (Din if residual else 0)
    flops = 2 * B * (Din * Dh + k2_real * Dout)
    weight_bytes = (w1_p.nbytes + w2h_p.nbytes + b1_p.nbytes + gamma_p.nbytes
                    + beta_p.nbytes + b2_p.nbytes
                    + (w2x_p.nbytes if residual else 0))
    bytes_accessed = x_p.nbytes + weight_bytes + B_p * Dout_p * itemsize
    cost = pl.CostEstimate(flops=flops, transcendentals=B,
                           bytes_accessed=bytes_accessed)

    act_bytes = 2 * tb * (Din_p + Dout_p) * itemsize          # double-buffered x / out tiles
    scratch_bytes = 6 * tb * max(Dh_p + Din_p, Dout_p) * 4    # f32 intermediates headroom
    vmem_limit = int(min(64 * 1024 * 1024,
                         max(8 * 1024 * 1024,
                             2 * (weight_bytes + act_bytes + scratch_bytes))))

    common = dict(tb=tb, b_pad=B_p, din_p=Din_p, dh_p=Dh_p, dout_p=Dout_p,
                  out_dtype=x.dtype, eps=eps, dh_real=Dh, residual=residual,
                  cost=cost, vmem_limit=vmem_limit)
    if residual:
        args = (x_p, w1_p, b1_p, gamma_p, beta_p, w2h_p, w2x_p, b2_p)
    else:
        args = (x_p, w1_p, b1_p, gamma_p, beta_p, w2h_p, b2_p)

    try:
        out_p = _build_mlp_call(single_buffer_weights=True, **common)(*args)
    except Exception:
        # pl.Buffered(1) not supported on this jax/backend -> default double buffering.
        out_p = _build_mlp_call(single_buffer_weights=False, **common)(*args)

    return out_p[:B, :Dout]


def mlp_ref(x, p, *, residual, eps=1e-5):
    h = x @ p["w1"] + p["b1"]
    mu = h.mean(-1, keepdims=True)
    var = ((h - mu) ** 2).mean(-1, keepdims=True)
    h = (h - mu) / jnp.sqrt(var + eps) * p["gamma"] + p["beta"]
    h = jnp.maximum(h, 0.0)
    out = h @ p["w2h"] + p["b2"]
    if residual:
        out = out + x @ p["w2x"]
    return out


def init_params(key, input_dim, hidden_dim, output_dim, residual):
    layer2_dim = hidden_dim + input_dim if residual else hidden_dim
    k1, k2, k3, k4, kx = jax.random.split(key, 5)
    # torch nn.Linear default init: U(-1/sqrt(fan_in), 1/sqrt(fan_in))
    lim1 = 1.0 / jnp.sqrt(input_dim)
    lim2 = 1.0 / jnp.sqrt(layer2_dim)
    w1 = jax.random.uniform(k1, (input_dim, hidden_dim), jnp.float32, -lim1, lim1)
    b1 = jax.random.uniform(k2, (1, hidden_dim), jnp.float32, -lim1, lim1)
    w2 = jax.random.uniform(k3, (layer2_dim, output_dim), jnp.float32, -lim2, lim2)
    b2 = jax.random.uniform(k4, (1, output_dim), jnp.float32, -lim2, lim2)
    params = dict(
        w1=w1, b1=b1,
        gamma=jnp.ones((1, hidden_dim), jnp.float32),
        beta=jnp.zeros((1, hidden_dim), jnp.float32),
        w2h=w2[:hidden_dim], b2=b2,
    )
    if residual:
        params["w2x"] = w2[hidden_dim:]
    return params, kx


if __name__ == "__main__":
    B, input_dim, hidden_dim, output_dim = 256, 32, 32, 16
    key = jax.random.PRNGKey(0)

    for residual in (True, False):
        params, kx = init_params(key, input_dim, hidden_dim, output_dim, residual)
        x = jax.random.normal(kx, (B, input_dim), jnp.float32)

        out = jax.block_until_ready(mlp_forward(x, params, residual=residual))
        ref = mlp_ref(x, params, residual=residual)

        assert out.shape == (B, output_dim)
        err = float(jnp.max(jnp.abs(out - ref)))
        assert jnp.allclose(out, ref, atol=1e-4, rtol=1e-4), \
            f"residual={residual}: max err {err}"

    print("KERNEL_OK")
</pallas_src>

<mosaic_0001>
module attributes {stable_mosaic.version = 11 : i64} {
  func.func @mlp_kernel(%arg0: i32, %arg1: memref<32x128xf32, #tpu.memory_space<vmem>>, %arg2: memref<128x128xf32, #tpu.memory_space<vmem>>, %arg3: memref<1x128xf32, #tpu.memory_space<vmem>>, %arg4: memref<1x128xf32, #tpu.memory_space<vmem>>, %arg5: memref<1x128xf32, #tpu.memory_space<vmem>>, %arg6: memref<128x128xf32, #tpu.memory_space<vmem>>, %arg7: memref<128x128xf32, #tpu.memory_space<vmem>>, %arg8: memref<1x128xf32, #tpu.memory_space<vmem>>, %arg9: memref<32x128xf32, #tpu.memory_space<vmem>>) attributes {dimension_semantics = [#tpu.dimension_semantics<parallel>], iteration_bounds = array<i64: 8>, scalar_prefetch = 0 : i64, scratch_operands = 0 : i64, tpu.core_type = #tpu.core_type<tc>, window_params = [{transform_indices = @transform_0, window_bounds = array<i64: 32, 128>}, {pipeline_mode = #tpu.pipeline_mode<synchronous>, transform_indices = @transform_1, window_bounds = array<i64: 128, 128>}, {pipeline_mode = #tpu.pipeline_mode<synchronous>, transform_indices = @transform_2, window_bounds = array<i64: 1, 128>}, {pipeline_mode = #tpu.pipeline_mode<synchronous>, transform_indices = @transform_3, window_bounds = array<i64: 1, 128>}, {pipeline_mode = #tpu.pipeline_mode<synchronous>, transform_indices = @transform_4, window_bounds = array<i64: 1, 128>}, {pipeline_mode = #tpu.pipeline_mode<synchronous>, transform_indices = @transform_5, window_bounds = array<i64: 128, 128>}, {pipeline_mode = #tpu.pipeline_mode<synchronous>, transform_indices = @transform_6, window_bounds = array<i64: 128, 128>}, {pipeline_mode = #tpu.pipeline_mode<synchronous>, transform_indices = @transform_7, window_bounds = array<i64: 1, 128>}, {transform_indices = @transform_8, window_bounds = array<i64: 32, 128>}]} {
    %c0 = arith.constant 0 : index
    %c0_0 = arith.constant 0 : index
    %0 = vector.load %arg1[%c0, %c0_0] : memref<32x128xf32, #tpu.memory_space<vmem>>, vector<32x128xf32>
    %c0_1 = arith.constant 0 : index
    %c0_2 = arith.constant 0 : index
    %1 = vector.load %arg2[%c0_1, %c0_2] : memref<128x128xf32, #tpu.memory_space<vmem>>, vector<128x128xf32>
    %cst = arith.constant dense<0.000000e+00> : vector<32x128xf32>
    %2 = tpu.matmul %0, %1, %cst {dimension_numbers = #tpu.dot_dimension_numbers<[1], [0], [0], [1], [0, 0, 1, 1], [], []>} : vector<32x128xf32>, vector<128x128xf32>, vector<32x128xf32> -> vector<32x128xf32>
    %c0_3 = arith.constant 0 : index
    %c0_4 = arith.constant 0 : index
    %3 = vector.load %arg3[%c0_3, %c0_4] : memref<1x128xf32, #tpu.memory_space<vmem>>, vector<1x128xf32>
    %4 = vector.broadcast %3 : vector<1x128xf32> to vector<32x128xf32>
    %5 = arith.addf %2, %4 : vector<32x128xf32>
    %6 = tpu.iota {dimensions = array<i32: 1>} : vector<1x128xi32>
    %c32_i32 = arith.constant 32 : i32
    %7 = vector.broadcast %c32_i32 : i32 to vector<1x128xi32>
    %8 = arith.cmpi slt, %6, %7 : vector<1x128xi32>
    %cst_5 = arith.constant dense<0.000000e+00> : vector<32xf32>
    %9 = vector.multi_reduction <add>, %5, %cst_5 [1] : vector<32x128xf32> to vector<32xf32>
    %10 = vector.shape_cast %9 : vector<32xf32> to vector<32x1xf32>
    %cst_6 = arith.constant 3.125000e-02 : f32
    %11 = vector.broadcast %cst_6 : f32 to vector<32x1xf32>
    %12 = arith.mulf %10, %11 : vector<32x1xf32>
    %13 = vector.broadcast %12 : vector<32x1xf32> to vector<32x128xf32>
    %14 = arith.subf %5, %13 : vector<32x128xf32>
    %cst_7 = arith.constant 0.000000e+00 : f32
    %15 = vector.shape_cast %8 : vector<1x128xi1> to vector<1x128xi1>
    %16 = vector.broadcast %15 : vector<1x128xi1> to vector<32x128xi1>
    %17 = vector.broadcast %cst_7 : f32 to vector<32x128xf32>
    %18 = arith.select %16, %14, %17 : vector<32x128xi1>, vector<32x128xf32>
    %19 = arith.mulf %18, %18 : vector<32x128xf32>
    %cst_8 = arith.constant dense<0.000000e+00> : vector<32xf32>
    %20 = vector.multi_reduction <add>, %19, %cst_8 [1] : vector<32x128xf32> to vector<32xf32>
    %21 = vector.shape_cast %20 : vector<32xf32> to vector<32x1xf32>
    %cst_9 = arith.constant 3.125000e-02 : f32
    %22 = vector.broadcast %cst_9 : f32 to vector<32x1xf32>
    %23 = arith.mulf %21, %22 : vector<32x1xf32>
    %cst_10 = arith.constant 9.99999974E-6 : f32
    %24 = vector.broadcast %cst_10 : f32 to vector<32x1xf32>
    %25 = arith.addf %23, %24 : vector<32x1xf32>
    %26 = math.rsqrt %25 : vector<32x1xf32>
    %27 = vector.broadcast %26 : vector<32x1xf32> to vector<32x128xf32>
    %28 = arith.mulf %18, %27 : vector<32x128xf32>
    %c0_11 = arith.constant 0 : index
    %c0_12 = arith.constant 0 : index
    %29 = vector.load %arg4[%c0_11, %c0_12] : memref<1x128xf32, #tpu.memory_space<vmem>>, vector<1x128xf32>
    %30 = vector.broadcast %29 : vector<1x128xf32> to vector<32x128xf32>
    %31 = arith.mulf %28, %30 : vector<32x128xf32>
    %c0_13 = arith.constant 0 : index
    %c0_14 = arith.constant 0 : index
    %32 = vector.load %arg5[%c0_13, %c0_14] : memref<1x128xf32, #tpu.memory_space<vmem>>, vector<1x128xf32>
    %33 = vector.broadcast %32 : vector<1x128xf32> to vector<32x128xf32>
    %34 = arith.addf %31, %33 : vector<32x128xf32>
    %cst_15 = arith.constant 0.000000e+00 : f32
    %35 = vector.broadcast %cst_15 : f32 to vector<32x128xf32>
    %36 = arith.maximumf %34, %35 : vector<32x128xf32>
    %c0_16 = arith.constant 0 : index
    %c0_17 = arith.constant 0 : index
    %37 = vector.load %arg6[%c0_16, %c0_17] : memref<128x128xf32, #tpu.memory_space<vmem>>, vector<128x128xf32>
    %cst_18 = arith.constant dense<0.000000e+00> : vector<32x128xf32>
    %38 = tpu.matmul %36, %37, %cst_18 {dimension_numbers = #tpu.dot_dimension_numbers<[1], [0], [0], [1], [0, 0, 1, 1], [], []>} : vector<32x128xf32>, vector<128x128xf32>, vector<32x128xf32> -> vector<32x128xf32>
    %c0_19 = arith.constant 0 : index
    %c0_20 = arith.constant 0 : index
    %39 = vector.load %arg7[%c0_19, %c0_20] : memref<128x128xf32, #tpu.memory_space<vmem>>, vector<128x128xf32>
    %cst_21 = arith.constant dense<0.000000e+00> : vector<32x128xf32>
    %40 = tpu.matmul %0, %39, %cst_21 {dimension_numbers = #tpu.dot_dimension_numbers<[1], [0], [0], [1], [0, 0, 1, 1], [], []>} : vector<32x128xf32>, vector<128x128xf32>, vector<32x128xf32> -> vector<32x128xf32>
    %41 = arith.addf %38, %40 : vector<32x128xf32>
    %c0_22 = arith.constant 0 : index
    %c0_23 = arith.constant 0 : index
    %42 = vector.load %arg8[%c0_22, %c0_23] : memref<1x128xf32, #tpu.memory_space<vmem>>, vector<1x128xf32>
    %43 = vector.broadcast %42 : vector<1x128xf32> to vector<32x128xf32>
    %44 = arith.addf %41, %43 : vector<32x128xf32>
    %c0_24 = arith.constant 0 : index
    %c0_25 = arith.constant 0 : index
    %45 = vector.load %arg9[%c0_24, %c0_25] : memref<32x128xf32, #tpu.memory_space<vmem>>, vector<32x128xf32>
    tpu.vector_store %arg9[%c0_24, %c0_25], %44 {strides = array<i32>} : memref<32x128xf32, #tpu.memory_space<vmem>>, vector<32x128xf32>,
    return
  }
  func.func @transform_0(%arg0: i32) -> (i32, i32) {
    %c0_i32 = arith.constant 0 : i32
    %c0_i32_0 = arith.constant 0 : i32
    return %arg0, %c0_i32 : i32, i32
  }
  func.func @transform_1(%arg0: i32) -> (i32, i32) {
    %c0_i32 = arith.constant 0 : i32
    %c0_i32_0 = arith.constant 0 : i32
    %c0_i32_1 = arith.constant 0 : i32
    return %c0_i32, %c0_i32_0 : i32, i32
  }
  func.func @transform_2(%arg0: i32) -> (i32, i32) {
    %c0_i32 = arith.constant 0 : i32
    %c0_i32_0 = arith.constant 0 : i32
    %c0_i32_1 = arith.constant 0 : i32
    return %c0_i32, %c0_i32_0 : i32, i32
  }
  func.func @transform_3(%arg0: i32) -> (i32, i32) {
    %c0_i32 = arith.constant 0 : i32
    %c0_i32_0 = arith.constant 0 : i32
    %c0_i32_1 = arith.constant 0 : i32
    return %c0_i32, %c0_i32_0 : i32, i32
  }
  func.func @transform_4(%arg0: i32) -> (i32, i32) {
    %c0_i32 = arith.constant 0 : i32
    %c0_i32_0 = arith.constant 0 : i32
    %c0_i32_1 = arith.constant 0 : i32
    return %c0_i32, %c0_i32_0 : i32, i32
  }
  func.func @transform_5(%arg0: i32) -> (i32, i32) {
    %c0_i32 = arith.constant 0 : i32
    %c0_i32_0 = arith.constant 0 : i32
    %c0_i32_1 = arith.constant 0 : i32
    return %c0_i32, %c0_i32_0 : i32, i32
  }
  func.func @transform_6(%arg0: i32) -> (i32, i32) {
    %c0_i32 = arith.constant 0 : i32
    %c0_i32_0 = arith.constant 0 : i32
    %c0_i32_1 = arith.constant 0 : i32
    return %c0_i32, %c0_i32_0 : i32, i32
  }
  func.func @transform_7(%arg0: i32) -> (i32, i32) {
    %c0_i32 = arith.constant 0 : i32
    %c0_i32_0 = arith.constant 0 : i32
    %c0_i32_1 = arith.constant 0 : i32
    return %c0_i32, %c0_i32_0 : i32, i32
  }
  func.func @transform_8(%arg0: i32) -> (i32, i32) {
    %c0_i32 = arith.constant 0 : i32
    %c0_i32_0 = arith.constant 0 : i32
    return %arg0, %c0_i32 : i32, i32
  }
}

module attributes {stable_mosaic.version = 11 : i64} {
  func.func @mlp_kernel(%arg0: i32, %arg1: memref<32x128xf32, #tpu.memory_space<vmem>>, %arg2: memref<128x128xf32, #tpu.memory_space<vmem>>, %arg3: memref<1x128xf32, #tpu.memory_space<vmem>>, %arg4: memref<1x128xf32, #tpu.memory_space<vmem>>, %arg5: memref<1x128xf32, #tpu.memory_space<vmem>>, %arg6: memref<128x128xf32, #tpu.memory_space<vmem>>, %arg7: memref<128x128xf32, #tpu.memory_space<vmem>>, %arg8: memref<1x128xf32, #tpu.memory_space<vmem>>, %arg9: memref<32x128xf32, #tpu.memory_space<vmem>>) attributes {dimension_semantics = [#tpu.dimension_semantics<parallel>], iteration_bounds = array<i64: 8>, scalar_prefetch = 0 : i64, scratch_operands = 0 : i64, tpu.core_type = #tpu.core_type<tc>, window_params = [{transform_indices = @transform_0, window_bounds = array<i64: 32, 128>}, {pipeline_mode = #tpu.pipeline_mode<synchronous>, transform_indices = @transform_1, window_bounds = array<i64: 128, 128>}, {pipeline_mode = #tpu.pipeline_mode<synchronous>, transform_indices = @transform_2, window_bounds = array<i64: 1, 128>}, {pipeline_mode = #tpu.pipeline_mode<synchronous>, transform_indices = @transform_3, window_bounds = array<i64: 1, 128>}, {pipeline_mode = #tpu.pipeline_mode<synchronous>, transform_indices = @transform_4, window_bounds = array<i64: 1, 128>}, {pipeline_mode = #tpu.pipeline_mode<synchronous>, transform_indices = @transform_5, window_bounds = array<i64: 128, 128>}, {pipeline_mode = #tpu.pipeline_mode<synchronous>, transform_indices = @transform_6, window_bounds = array<i64: 128, 128>}, {pipeline_mode = #tpu.pipeline_mode<synchronous>, transform_indices = @transform_7, window_bounds = array<i64: 1, 128>}, {transform_indices = @transform_8, window_bounds = array<i64: 32, 128>}]} {
    %c0 = arith.constant 0 : index
    %c0_0 = arith.constant 0 : index
    %0 = vector.load %arg1[%c0, %c0_0] : memref<32x128xf32, #tpu.memory_space<vmem>>, vector<32x128xf32>
    %c0_1 = arith.constant 0 : index
    %c0_2 = arith.constant 0 : index
    %1 = vector.load %arg2[%c0_1, %c0_2] : memref<128x128xf32, #tpu.memory_space<vmem>>, vector<128x128xf32>
    %cst = arith.constant dense<0.000000e+00> : vector<32x128xf32>
    %2 = tpu.matmul %0, %1, %cst {dimension_numbers = #tpu.dot_dimension_numbers<[1], [0], [0], [1], [0, 0, 1, 1], [], []>} : vector<32x128xf32>, vector<128x128xf32>, vector<32x128xf32> -> vector<32x128xf32>
    %c0_3 = arith.constant 0 : index
    %c0_4 = arith.constant 0 : index
    %3 = vector.load %arg3[%c0_3, %c0_4] : memref<1x128xf32, #tpu.memory_space<vmem>>, vector<1x128xf32>
    %4 = vector.broadcast %3 : vector<1x128xf32> to vector<32x128xf32>
    %5 = arith.addf %2, %4 : vector<32x128xf32>
    %6 = tpu.iota {dimensions = array<i32: 1>} : vector<1x128xi32>
    %c32_i32 = arith.constant 32 : i32
    %7 = vector.broadcast %c32_i32 : i32 to vector<1x128xi32>
    %8 = arith.cmpi slt, %6, %7 : vector<1x128xi32>
    %cst_5 = arith.constant dense<0.000000e+00> : vector<32xf32>
    %9 = vector.multi_reduction <add>, %5, %cst_5 [1] : vector<32x128xf32> to vector<32xf32>
    %10 = vector.shape_cast %9 : vector<32xf32> to vector<32x1xf32>
    %cst_6 = arith.constant 3.125000e-02 : f32
    %11 = vector.broadcast %cst_6 : f32 to vector<32x1xf32>
    %12 = arith.mulf %10, %11 : vector<32x1xf32>
    %13 = vector.broadcast %12 : vector<32x1xf32> to vector<32x128xf32>
    %14 = arith.subf %5, %13 : vector<32x128xf32>
    %cst_7 = arith.constant 0.000000e+00 : f32
    %15 = vector.shape_cast %8 : vector<1x128xi1> to vector<1x128xi1>
    %16 = vector.broadcast %15 : vector<1x128xi1> to vector<32x128xi1>
    %17 = vector.broadcast %cst_7 : f32 to vector<32x128xf32>
    %18 = arith.select %16, %14, %17 : vector<32x128xi1>, vector<32x128xf32>
    %19 = arith.mulf %18, %18 : vector<32x128xf32>
    %cst_8 = arith.constant dense<0.000000e+00> : vector<32xf32>
    %20 = vector.multi_reduction <add>, %19, %cst_8 [1] : vector<32x128xf32> to vector<32xf32>
    %21 = vector.shape_cast %20 : vector<32xf32> to vector<32x1xf32>
    %cst_9 = arith.constant 3.125000e-02 : f32
    %22 = vector.broadcast %cst_9 : f32 to vector<32x1xf32>
    %23 = arith.mulf %21, %22 : vector<32x1xf32>
    %cst_10 = arith.constant 9.99999974E-6 : f32
    %24 = vector.broadcast %cst_10 : f32 to vector<32x1xf32>
    %25 = arith.addf %23, %24 : vector<32x1xf32>
    %26 = math.rsqrt %25 : vector<32x1xf32>
    %27 = vector.broadcast %26 : vector<32x1xf32> to vector<32x128xf32>
    %28 = arith.mulf %18, %27 : vector<32x128xf32>
    %c0_11 = arith.constant 0 : index
    %c0_12 = arith.constant 0 : index
    %29 = vector.load %arg4[%c0_11, %c0_12] : memref<1x128xf32, #tpu.memory_space<vmem>>, vector<1x128xf32>
    %30 = vector.broadcast %29 : vector<1x128xf32> to vector<32x128xf32>
    %31 = arith.mulf %28, %30 : vector<32x128xf32>
    %c0_13 = arith.constant 0 : index
    %c0_14 = arith.constant 0 : index
    %32 = vector.load %arg5[%c0_13, %c0_14] : memref<1x128xf32, #tpu.memory_space<vmem>>, vector<1x128xf32>
    %33 = vector.broadcast %32 : vector<1x128xf32> to vector<32x128xf32>
    %34 = arith.addf %31, %33 : vector<32x128xf32>
    %cst_15 = arith.constant 0.000000e+00 : f32
    %35 = vector.broadcast %cst_15 : f32 to vector<32x128xf32>
    %36 = arith.maximumf %34, %35 : vector<32x128xf32>
    %c0_16 = arith.constant 0 : index
    %c0_17 = arith.constant 0 : index
    %37 = vector.load %arg6[%c0_16, %c0_17] : memref<128x128xf32, #tpu.memory_space<vmem>>, vector<128x128xf32>
    %cst_18 = arith.constant dense<0.000000e+00> : vector<32x128xf32>
    %38 = tpu.matmul %36, %37, %cst_18 {dimension_numbers = #tpu.dot_dimension_numbers<[1], [0], [0], [1], [0, 0, 1, 1], [], []>} : vector<32x128xf32>, vector<128x128xf32>, vector<32x128xf32> -> vector<32x128xf32>
    %c0_19 = arith.constant 0 : index
    %c0_20 = arith.constant 0 : index
    %39 = vector.load %arg7[%c0_19, %c0_20] : memref<128x128xf32, #tpu.memory_space<vmem>>, vector<128x128xf32>
    %cst_21 = arith.constant dense<0.000000e+00> : vector<32x128xf32>
    %40 = tpu.matmul %0, %39, %cst_21 {dimension_numbers = #tpu.dot_dimension_numbers<[1], [0], [0], [1], [0, 0, 1, 1], [], []>} : vector<32x128xf32>, vector<128x128xf32>, vector<32x128xf32> -> vector<32x128xf32>
    %41 = arith.addf %38, %40 : vector<32x128xf32>
    %c0_22 = arith.constant 0 : index
    %c0_23 = arith.constant 0 : index
    %42 = vector.load %arg8[%c0_22, %c0_23] : memref<1x128xf32, #tpu.memory_space<vmem>>, vector<1x128xf32>
    %43 = vector.broadcast %42 : vector<1x128xf32> to vector<32x128xf32>
    %44 = arith.addf %41, %43 : vector<32x128xf32>
    %c0_24 = arith.constant 0 : index
    %c0_25 = arith.constant 0 : index
    %45 = vector.load %arg9[%c0_24, %c0_25] : memref<32x128xf32, #tpu.memory_space<vmem>>, vector<32x128xf32>
    tpu.vector_store %arg9[%c0_24, %c0_25], %44 {strides = array<i32>} : memref<32x128xf32, #tpu.memory_space<vmem>>, vector<32x128xf32>,
    return
  }
  func.func @transform_0(%arg0: i32) -> (i32, i32) {
    %c0_i32 = arith.constant 0 : i32
    %c0_i32_0 = arith.constant 0 : i32
    return %arg0, %c0_i32 : i32, i32
  }
  func.func @transform_1(%arg0: i32) -> (i32, i32) {
    %c0_i32 = arith.constant 0 : i32
    %c0_i32_0 = arith.constant 0 : i32
    %c0_i32_1 = arith.constant 0 : i32
    return %c0_i32, %c0_i32_0 : i32, i32
  }
  func.func @transform_2(%arg0: i32) -> (i32, i32) {
    %c0_i32 = arith.constant 0 : i32
    %c0_i32_0 = arith.constant 0 : i32
    %c0_i32_1 = arith.constant 0 : i32
    return %c0_i32, %c0_i32_0 : i32, i32
  }
  func.func @transform_3(%arg0: i32) -> (i32, i32) {
    %c0_i32 = arith.constant 0 : i32
    %c0_i32_0 = arith.constant 0 : i32
    %c0_i32_1 = arith.constant 0 : i32
    return %c0_i32, %c0_i32_0 : i32, i32
  }
  func.func @transform_4(%arg0: i32) -> (i32, i32) {
    %c0_i32 = arith.constant 0 : i32
    %c0_i32_0 = arith.constant 0 : i32
    %c0_i32_1 = arith.constant 0 : i32
    return %c0_i32, %c0_i32_0 : i32, i32
  }
  func.func @transform_5(%arg0: i32) -> (i32, i32) {
    %c0_i32 = arith.constant 0 : i32
    %c0_i32_0 = arith.constant 0 : i32
    %c0_i32_1 = arith.constant 0 : i32
    return %c0_i32, %c0_i32_0 : i32, i32
  }
  func.func @transform_6(%arg0: i32) -> (i32, i32) {
    %c0_i32 = arith.constant 0 : i32
    %c0_i32_0 = arith.constant 0 : i32
    %c0_i32_1 = arith.constant 0 : i32
    return %c0_i32, %c0_i32_0 : i32, i32
  }
  func.func @transform_7(%arg0: i32) -> (i32, i32) {
    %c0_i32 = arith.constant 0 : i32
    %c0_i32_0 = arith.constant 0 : i32
    %c0_i32_1 = arith.constant 0 : i32
    return %c0_i32, %c0_i32_0 : i32, i32
  }
  func.func @transform_8(%arg0: i32) -> (i32, i32) {
    %c0_i32 = arith.constant 0 : i32
    %c0_i32_0 = arith.constant 0 : i32
    return %arg0, %c0_i32 : i32, i32
  }
}

</mosaic_0001>

<bundles_post_ra>
// kernel: tpu_custom_call.1
= control target key start
LH: loop header
LB: loop body
LE: loop exit
PB: predicated region body
PF: predicated region fallthrough
CT: control target
= control target key end

     0   :  { %13 = vsyncpa [#allocation3], 0  ;;  %s1886_s0 = inlined_call_operand.hbm [shape: f32[256,128], index: 0, kind: input, shape index: {}]   ;;  %s1887_s1 = inlined_call_operand.hbm [shape: f32[128,128], index: 1, kind: input, shape index: {}]   ;;  %s1888_s2 = inlined_call_operand.vmem [shape: f32[1,128], index: 2, kind: input, shape index: {}]   ;;  %s1889_s3 = inlined_call_operand.vmem [shape: f32[1,128], index: 3, kind: input, shape index: {}]   ;;  %s1890_s4 = inlined_call_operand.vmem [shape: f32[1,128], index: 4, kind: input, shape index: {}]   ;;  %s1891_s5 = inlined_call_operand.hbm [shape: f32[128,128], index: 5, kind: input, shape index: {}]   ;;  %s1892_s6 = inlined_call_operand.hbm [shape: f32[128,128], index: 6, kind: input, shape index: {}]   ;;  %s1893_s7 = inlined_call_operand.vmem [shape: f32[1,128], index: 7, kind: input, shape index: {}]   ;;  %s1894_s8 = inlined_call_operand.hbm [shape: f32[256,128], index: 8, kind: output, shape index: {}]  }
   0x1   :  { %15 = vsyncpa [#allocation3 + $0x1], 0 }
   0x2   :  { %16 = vsyncpa [#allocation6], 0 }
   0x3   :  { %17 = vsyncpa [#allocation9], 0 }
   0x4   :  { %18 = vsyncpa [#allocation4], 0 }
   0x5   :  { %20 = vsyncpa [#allocation4 + $0x1], 0  ;;  %s1543_s27 = smov 0   ;;  %s1545_s28 = smov 0  }
   0x6   :  { %s1547_s29 = smov 0   ;;  %s1549_s30 = smov 0  }
   0x7 LB: > { %1900 = sst [smem:[#allocation15_spill]] %s1475_s27  ;;  %s1564_s9 = sadd.s32 4294967295, %s1487_s30   ;;  %s1487_s30 = sphi %s1549_s30, %s1922_s30   ;;  %s1483_s29 = sphi %s1547_s29, %s1921_s29   ;;  %s1479_s28 = sphi %s1545_s28, %s1920_s28   ;;  %s1475_s27 = sphi %s1543_s27, %s1919_s27  }
   0x8   : > { %s894_s10 = sadd.s32 4294967294, %s1487_s30   ;;  %p46_p0 = scmp.ne.s32.totalorder %s1479_s28, %s1475_s27 }
   0x9   : > { %p1895_p1 = scmp.eq.s32.totalorder %s1564_s9, 0  ;;  %p223_p3 = scmp.eq.s32.totalorder %s894_s10, 7 }
   0xa   : > { %p895_p5 = scmp.ge.s32.totalorder %s1487_s30, 1  ;;  %p230_p7 = scmp.lt.s32.totalorder %s1487_s30, 9 }
   0xb   : > { %p1573_p4 = por %p1895_p1, %p46_p0  ;;  %p1578_p6 = por %p223_p3, %p46_p0 }
   0xc   : > { %p1583_p8 = pnand %p895_p5, %p230_p7  ;;  %s1489_s14 = smov [#allocation5]  }
   0xd   : > { %s1901_s11 = scalar_select %p1573_p4, 1, 0 }
   0xe   : > { %s1902_s12 = scalar_select %p1578_p6, 1, 0 }
   0xf   : > { %s1904_s13 = scalar_select %p1583_p8, 1, 0 }
  0x10   : > { %1903 = sst [smem:[#allocation16_spill]] %s1902_s12  ;;  %s242_s15 = sshll.u32 %s1489_s14, 4  ;;  %s1587_s15 = int_to_ptr.vmem [resolvable:$true] %s242_s15 }
  0x11   : > { %p1226_p9 = pneg %p1583_p8  ;;  %s1490_s17 = smov [#allocation7]  }
  0x12   : > { %s264_s18 = sshll.u32 %s1490_s17, 4  ;;  %s1491_s19 = smov [#allocation8]   ;;  %s1597_s18 = int_to_ptr.vmem [resolvable:$true] %s264_s18 }
  0x13   : > { %p1593_p10 = pnand %p1226_p9, %p1895_p1  ;;  %s1599_s20 = sshll.u32 %s1491_s19, 4  ;;  %s278_s20 = int_to_ptr.vmem [resolvable:$true] %s1599_s20 }
  0x14   : > { %s1299_s23 = scalar_lea.hbm %s1887_s1, 2048 }
  0x15   : > { %p1300_p11 = scmp.ne.s32.totalorder %s1887_s1, %s1299_s23  ;;  %p1609_p12 = pneg %p1593_p10 }
  0x16   : > { %p1306_p3 = scmp.lt.u32.totalorder %s1299_s23, %s1887_s1 }
  0x17   : > { %p1302_p13 = pnand %p1609_p12, %p1300_p11 }
  0x19   : > { %p1303_p0 = pneg %p1302_p13 }
  0x1b   : > { %p1308_p5 = pnand %p1306_p3, %p1303_p0 }
  0x1d   : > { %1311 = shalt.err (!%p1308_p5)
}
  0x1e   : > { %s1312_s17 = scalar_lea.vmem %s1587_s15, 2048  ;;  %p1320_p2 = scmp.lt.s32.totalorder %s1587_s15, %s1587_s15 }
  0x1f   : > { %p1313_p7 = scmp.ne.s32.totalorder %s1587_s15, %s1312_s17  ;;  %p1321_p6 = scmp.lt.s32.totalorder %s1312_s17, %s1312_s17 }
  0x21   : > { %p1315_p9 = pnand %p1313_p7, %p1609_p12  ;;  %p1322_p11 = por %p1321_p6, %p1320_p2 }
  0x23   : > { %p1316_p1 = pneg %p1315_p9 }
  0x25   : > { %p1323_p13 = pnand %p1322_p11, %p1316_p1 }
  0x27   : > { %1326 = shalt.err (!%p1323_p13)
}
  0x28   : > { %s1492_s19 = smov 128   ;;  %s1493_s21 = smov 8  }
  0x29   : > { %1229 = dma.hbm_to_vmem [thread:$0]  (!%p1593_p10), %s1887_s1, 2048, %s1587_s15, [#allocation6], %s1492_s19, %s1492_s19, %s1493_s21  }
  0x2a   : > { %s1327_s10 = scalar_lea.hbm %s1891_s5, 2048 }
  0x2b   : > { %p1328_p1 = scmp.ne.s32.totalorder %s1891_s5, %s1327_s10  ;;  %p1334_p0 = scmp.lt.u32.totalorder %s1327_s10, %s1891_s5 }
  0x2d   : > { %p1330_p2 = pnand %p1328_p1, %p1609_p12 }
  0x2f   : > { %p1331_p6 = pneg %p1330_p2 }
  0x31   : > { %p1336_p3 = pnand %p1334_p0, %p1331_p6 }
  0x33   : > { %1339 = shalt.err (!%p1336_p3)
}
  0x34   : > { %s1340_s15 = scalar_lea.vmem %s1597_s18, 2048  ;;  %p1348_p11 = scmp.lt.s32.totalorder %s1597_s18, %s1597_s18 }
  0x35   : > { %p1341_p5 = scmp.ne.s32.totalorder %s1597_s18, %s1340_s15  ;;  %p1349_p13 = scmp.lt.s32.totalorder %s1340_s15, %s1340_s15 }
  0x37   : > { %p1343_p7 = pnand %p1341_p5, %p1609_p12  ;;  %p1350_p1 = por %p1349_p13, %p1348_p11 }
  0x39   : > { %p1344_p9 = pneg %p1343_p7 }
  0x3b   : > { %p1351_p2 = pnand %p1350_p1, %p1344_p9 }
  0x3d   : > { %1354 = shalt.err (!%p1351_p2)
}
  0x3e   : > { %1232 = dma.hbm_to_vmem [thread:$0]  (!%p1593_p10), %s1891_s5, 2048, %s1597_s18, [#allocation6], %s1492_s19, %s1492_s19, %s1493_s21  }
  0x3f   : > { %s1355_s24 = scalar_lea.hbm %s1892_s6, 2048 }
  0x40   : > { %p1356_p6 = scmp.ne.s32.totalorder %s1892_s6, %s1355_s24  ;;  %p1362_p5 = scmp.lt.u32.totalorder %s1355_s24, %s1892_s6 }
  0x42   : > { %p1358_p0 = pnand %p1356_p6, %p1609_p12 }
  0x44   : > { %p1359_p3 = pneg %p1358_p0 }
  0x46   : > { %p1364_p7 = pnand %p1362_p5, %p1359_p3 }
  0x48   : > { %1367 = shalt.err (!%p1364_p7)
}
  0x49   : > { %s1368_s15 = scalar_lea.vmem %s278_s20, 2048  ;;  %p1376_p1 = scmp.lt.s32.totalorder %s278_s20, %s278_s20 }
  0x4a   : > { %p1369_p9 = scmp.ne.s32.totalorder %s278_s20, %s1368_s15  ;;  %p1377_p2 = scmp.lt.s32.totalorder %s1368_s15, %s1368_s15 }
  0x4c   : > { %p1371_p11 = pnand %p1369_p9, %p1609_p12  ;;  %p1378_p4 = por %p1377_p2, %p1376_p1 }
  0x4e   : > { %p1372_p13 = pneg %p1371_p11 }
  0x50   : > { %p1379_p8 = pnand %p1378_p4, %p1372_p13 }
  0x52   : > { %1382 = shalt.err (!%p1379_p8)
}
  0x53   : > { %1235 = dma.hbm_to_vmem [thread:$0]  (!%p1593_p10), %s1892_s6, 2048, %s278_s20, [#allocation9], %s1492_s19, %s1492_s19, %s1493_s21  }
  0x54   : > { %s1682_s26 = sadd.s32 1, %s1487_s30   ;;  %s33_s12 = sadd.s32 1, %s1483_s29 }
  0x55   : > { %s30_s16 = ssub.s32 %s1487_s30, %s1682_s26  ;;  %p40_p8 = scmp.ne.s32.totalorder %s1483_s29, %s1479_s28 }
  0x56   : > { %p31_p4 = scmp.eq.s32.totalorder %s30_s16, 0  ;;  %p41_p12 = scmp.eq.s32.totalorder %s1487_s30, 0 }
  0x57   : > { %p1247_p6 = scmp.lt.s32.totalorder %s1487_s30, 8  ;;  %p1907_p3 = scmp.eq.s32.totalorder %s1564_s9, 7 }
  0x58   : > { %s1692_s22 = scalar_select %p31_p4, %s1483_s29, %s33_s12  }
  0x59   : > { %p42_p0 = por %p41_p12, %p40_p8  ;;  %p1696_p5 = por %p1907_p3, %p40_p8 }
  0x5a   : > { %s294_s24 = sand.u32 1, %s1483_s29   ;;  %s918_s25 = sshll.u32 %s1487_s30, 9 }
  0x5b   : > { %s900_s20 = sshll.u32 %s294_s24, 5  ;;  %s1705_s17 = scalar_lea.hbm %s1886_s0, %s918_s25 }
  0x5c   : > { %s298_s15 = scalar_lea.vmem [#allocation2], %s900_s20  ;;  %p1707_p10 = pnand %p1247_p6, %p42_p0 }
  0x5d   : > { %s305_s18 = sshll.u32 %s298_s15, 4  ;;  %s1713_s16 = scalar_lea.sflag [#allocation3], %s294_s24  ;;  %s1711_s18 = int_to_ptr.vmem [resolvable:$true] %s305_s18 }
  0x5e   : > { %s1383_s12 = scalar_lea.hbm %s1705_s17, 512  ;;  %p1385_p9 = pneg %p1707_p10 }
  0x5f   : > { %p1384_p7 = scmp.ne.s32.totalorder %s1705_s17, %s1383_s12  ;;  %s1388_s10 = scalar_lea.hbm %s1886_s0, 4096 }
  0x60   : > { %p1389_p1 = scmp.lt.u32.totalorder %s1705_s17, %s1886_s0  ;;  %p1390_p2 = scmp.lt.u32.totalorder %s1388_s10, %s1383_s12 }
  0x61   : > { %p1386_p11 = pnand %p1385_p9, %p1384_p7  ;;  %p1392_p8 = scmp.lt.u32.totalorder %s1383_s12, %s1705_s17 }
  0x62   : > { %p1391_p4 = por %p1390_p2, %p1389_p1 }
  0x63   : > { %p1387_p13 = pneg %p1386_p11 }
  0x64   : > { %p1393_p12 = por %p1392_p8, %p1391_p4 }
  0x66   : > { %p1394_p6 = pnand %p1393_p12, %p1387_p13 }
  0x68   : > { %1397 = shalt.err (!%p1394_p6)
}
  0x69   : > { %s1398_s24 = scalar_lea.vmem %s1711_s18, 512  ;;  %s1494_s25 = smov [#allocation2]  }
  0x6a   : > { %p1399_p0 = scmp.ne.s32.totalorder %s1711_s18, %s1398_s24  ;;  %s1403_s20 = sshll.u32 %s1494_s25, 4  ;;  %s1404_s20 = int_to_ptr.vmem [resolvable:$false] %s1403_s20 }
  0x6b   : > { %s1405_s14 = scalar_lea.vmem %s1404_s20, 1024  ;;  %p1406_p11 = scmp.lt.s32.totalorder %s1711_s18, %s1404_s20 }
  0x6c   : > { %p1401_p3 = pnand %p1399_p0, %p1385_p9  ;;  %p1407_p1 = scmp.lt.s32.totalorder %s1405_s14, %s1398_s24 }
  0x6e   : > { %p1402_p7 = pneg %p1401_p3  ;;  %p1408_p2 = por %p1407_p1, %p1406_p11 }
  0x70   : > { %p1409_p4 = pnand %p1408_p2, %p1402_p7 }
  0x72   : > { %1412 = shalt.err (!%p1409_p4)
}
  0x73   : > { %1239 = dma.hbm_to_vmem [thread:$0]  (!%p1707_p10), %s1705_s17, 512, %s1711_s18, %s1713_s16, %s1492_s19, %s1492_s19, %s1493_s21  }
  0x74   : > { %p1910_p9 = scmp.ne.s32.totalorder %s1904_s13, 0 }
  0x75   : > { %s1747_s12 = sand.u32 (!%p1910_p9), 1, %s1479_s28   ;;  %p1911_p13 = scmp.ne.s32.totalorder (!%p1910_p9), %s1901_s11, 0 }
  0x76   : > { %317 = sbr.rel (%p1910_p9) target bundleno = 935 (0x3a7), region = 52  ;;  %s904_s10 = sshll.u32 (!%p1910_p9), %s1747_s12, 5 }
  0x77   : > { %s320_s15 = scalar_lea.sflag (!%p1910_p9), [#allocation3], %s1747_s12  ;;  %s1753_s27 = scalar_lea.vmem (!%p1910_p9), [#allocation2], %s904_s10 }
  0x7d   : > { %1458 = dma.done.wait (%p1911_p13), %s320_s15, 512  }
  0x7e   : > { %1460 = vsyncadd (%p1911_p13), %s320_s15, 4294966784  ;;  %p1912_p10 = scmp.eq.s32.totalorder %s1564_s9, 0 }
  0x80   : > { %1462 = dma.done.wait (%p1912_p10), [#allocation6], 4096   ;;  %p1913_p8 = pmov %p1912_p10 }
  0x82   : > { %1464 = vsyncadd (%p1913_p8), [#allocation6], 4294963200  ;;  %p1914_p12 = pmov %p1913_p8 }
  0x83   : > { %p1915_p6 = pmov %p1913_p8 }
  0x84   : > { %1466 = dma.done.wait (%p1914_p12), [#allocation9], 2048  }
  0x85   : > { %1468 = vsyncadd (%p1915_p6), [#allocation9], 4294965248  ;;  %v374_v0 = vld [vmem:[#allocation5] sm:$0xff]  ;;  %v375_v1 = vld [vmem:[#allocation5 + $0x8] sm:$0xff]  ;;  %s367_s25 = scalar_lea.vmem [#allocation10], %s904_s10  ;;  %s919_s14 = sshll.u32 %s1564_s9, 9 }
  0x86   : > { %v376_v2 = vld [vmem:[#allocation5 + $0x10] sm:$0xff]  ;;  %v1094_v3 = vpack.c.bf16 %v375_v1, %v374_v0  ;;  %v377_v4 = vld [vmem:[#allocation5 + $0x18] sm:$0xff]  ;;  %v378_v6 = vld [vmem:[#allocation5 + $0x20] sm:$0xff]  ;;  %s792_s20 = sshll.u32 %s367_s25, 4  ;;  %s1843_s10 = scalar_lea.hbm %s1894_s8, %s919_s14  ;;  %s1838_s20 = int_to_ptr.vmem [resolvable:$true] %s792_s20 }
  0x87   : > { %v1098_v5 = vpack.c.bf16 %v377_v4, %v376_v2  ;;  %v379_v7 = vld [vmem:[#allocation5 + $0x28] sm:$0xff]  ;;  %v370_v9 = vld [vmem:[%s1753_s27] sm:$0xff]  ;;  %v380_v10 = vld [vmem:[#allocation5 + $0x30] sm:$0xff]  ;;  %s779_s9 = scalar_lea.sflag [#allocation4], %s1747_s12  ;;  %s1413_s11 = scalar_lea.vmem %s1838_s20, 512 }
  0x88   : > { %1095 = vmatprep.subr.bf16.mxu0 %v1094_v3  ;;  %v1102_v8 = vpack.c.bf16 %v379_v7, %v378_v6  ;;  %v381_v11 = vld [vmem:[#allocation5 + $0x38] sm:$0xff]  ;;  %1012 = vmatprep.mubr.f32.mxu0 %v370_v9  ;;  %v382_v13 = vld [vmem:[#allocation5 + $0x40] sm:$0xff]  ;;  %v383_v14 = vld [vmem:[#allocation5 + $0x48] sm:$0xff]  ;;  %p1414_p0 = scmp.ne.s32.totalorder %s1838_s20, %s1413_s11  ;;  %s1495_s13 = smov [#allocation10]  }
  0x89   : > { %1097 = vmatpush3.bf16.msra.mxu0 %v1094_v3  ;;  %1050 = vmatprep.mubr.f32.mxu1 %v370_v9  ;;  %v1106_v12 = vpack.c.bf16 %v381_v11, %v380_v10  ;;  %v1110_v15 = vpack.c.bf16 %v383_v14, %v382_v13  ;;  %v384_v16 = vld [vmem:[#allocation5 + $0x50] sm:$0xff]  ;;  %v385_v17 = vld [vmem:[#allocation5 + $0x58] sm:$0xff]  ;;  %v386_v19 = vld [vmem:[#allocation5 + $0x60] sm:$0xff]  ;;  %v482_v3 = vlaneseq  ;;  %s1417_s19 = sshll.u32 %s1495_s13, 4  ;;  %s1418_s19 = int_to_ptr.vmem [resolvable:$false] %s1417_s19 }
  0x8a   : > { %1099 = vmatprep.subr.bf16.mxu0 %v1098_v5  ;;  %v1114_v18 = vpack.c.bf16 %v385_v17, %v384_v16  ;;  %v387_v20 = vld [vmem:[#allocation5 + $0x68] sm:$0xff]  ;;  %v388_v22 = vld [vmem:[#allocation5 + $0x70] sm:$0xff]  ;;  %v389_v23 = vld [vmem:[#allocation5 + $0x78] sm:$0xff]  ;;  %p1415_p3 = pnand %p1414_p0, %p1696_p5  ;;  %s1419_s21 = scalar_lea.vmem %s1418_s19, 1024 }
  0x8b   : > { %v1118_v21 = vpack.c.bf16 %v387_v20, %v386_v19  ;;  %v1122_v24 = vpack.c.bf16 %v389_v23, %v388_v22  ;;  %v1769_v25 = vld [vmem:[%s1753_s27 + $0x8] sm:$0xff]  ;;  %v1772_v26 = vld [vmem:[%s1753_s27 + $0x10] sm:$0xff]  ;;  %v1777_v27 = vld [vmem:[%s1753_s27 + $0x18] sm:$0xff]  ;;  %v483_v4 = vand.u32 127, %v482_v3  ;;  %p1420_p11 = scmp.lt.s32.totalorder %s1838_s20, %s1418_s19  ;;  %p1421_p1 = scmp.lt.s32.totalorder %s1419_s21, %s1413_s11 }
  0x8c   : > { %v909_v28 = vld [vmem:[%s1888_s2] ss:$0 sm:$0xff]  ;;  %v578_v38 = vld [vmem:[#allocation8 + $0x8] sm:$0xff]  ;;  %v579_v39 = vld [vmem:[#allocation8 + $0x10] sm:$0xff]  ;;  %p1416_p7 = pneg %p1415_p3 }
  0x8d   : > { %1101 = vmatpush3.bf16.msra.mxu0 %v1098_v5  ;;  %v577_v37 = vld [vmem:[#allocation8] sm:$0xff]  ;;  %v580_v41 = vld [vmem:[#allocation8 + $0x18] sm:$0xff]  ;;  %v582_v44 = vld [vmem:[#allocation8 + $0x28] sm:$0xff]  ;;  %vm484_vm0 = vcmp.lt.s32.totalorder %v483_v4, 32  ;;  %p1422_p2 = por %p1421_p1, %p1420_p11 }
  0x8e   : > { %1103 = vmatprep.subr.bf16.mxu0 %v1102_v8  ;;  %v1126_v40 = vpack.c.bf16 %v578_v38, %v577_v37  ;;  %v1130_v42 = vpack.c.bf16 %v580_v41, %v579_v39  ;;  %v581_v43 = vld [vmem:[#allocation8 + $0x20] sm:$0xff]  ;;  %v583_v46 = vld [vmem:[#allocation8 + $0x30] sm:$0xff]  ;;  %v562_v48 = vld [vmem:[#allocation7 + $0x8] sm:$0xff] }
  0x8f   : > { %v1134_v45 = vpack.c.bf16 %v582_v44, %v581_v43  ;;  %v561_v47 = vld [vmem:[#allocation7] sm:$0xff]  ;;  %v584_v49 = vld [vmem:[#allocation8 + $0x38] sm:$0xff]  ;;  %v563_v51 = vld [vmem:[#allocation7 + $0x10] sm:$0xff]  ;;  %p1423_p4 = pnand %p1422_p2, %p1416_p7 }
  0x90   : > { %1127 = vmatprep.subr.bf16.mxu1 %v1126_v40  ;;  %v1158_v50 = vpack.c.bf16 %v562_v48, %v561_v47  ;;  %v564_v52 = vld [vmem:[#allocation7 + $0x18] sm:$0xff]  ;;  %v1138_v54 = vpack.c.bf16 %v584_v49, %v583_v46  ;;  %v585_v55 = vld [vmem:[#allocation8 + $0x40] sm:$0xff]  ;;  %v586_v56 = vld [vmem:[#allocation8 + $0x48] sm:$0xff] }
  0x91   : > { %1105 = vmatpush3.bf16.msra.mxu0 %v1102_v8  ;;  %1129 = vmatpush3.bf16.msra.mxu1 %v1126_v40  ;;  %v1162_v53 = vpack.c.bf16 %v564_v52, %v563_v51  ;;  %v1142_v57 = vpack.c.bf16 %v586_v56, %v585_v55  ;;  %v587_v58 = vld [vmem:[#allocation8 + $0x50] sm:$0xff]  ;;  %v588_v59 = vld [vmem:[#allocation8 + $0x58] sm:$0xff]  ;;  %v589_v61 = vld [vmem:[#allocation8 + $0x60] sm:$0xff] }
  0x92   : > { %1107 = vmatprep.subr.bf16.mxu0 %v1106_v12  ;;  %1131 = vmatprep.subr.bf16.mxu1 %v1130_v42  ;;  %v1146_v60 = vpack.c.bf16 %v588_v59, %v587_v58  ;;  %v590_v62 = vld [vmem:[#allocation8 + $0x68] sm:$0xff]  ;;  %v591_v0 = vld [vmem:[#allocation8 + $0x70] sm:$0xff]  ;;  %v592_v1 = vld [vmem:[#allocation8 + $0x78] sm:$0xff] }
  0x93   : > { %v1150_v63 = vpack.c.bf16 %v590_v62, %v589_v61  ;;  %v1154_v2 = vpack.c.bf16 %v592_v1, %v591_v0  ;;  %v573_v37 = vld [vmem:[#allocation7 + $0x60] sm:$0xff]  ;;  %v574_v38 = vld [vmem:[#allocation7 + $0x68] sm:$0xff]  ;;  %v575_v40 = vld [vmem:[#allocation7 + $0x70] sm:$0xff] }
  0x94   : > { %v1182_v39 = vpack.c.bf16 %v574_v38, %v573_v37  ;;  %v576_v41 = vld [vmem:[#allocation7 + $0x78] sm:$0xff]  ;;  %v910_v58 = vld [vmem:[%s1889_s3] ss:$0 sm:$0xff] }
  0x95   : > { %1109 = vmatpush3.bf16.msra.mxu0 %v1106_v12  ;;  %1133 = vmatpush3.bf16.msra.mxu1 %v1130_v42  ;;  %v1186_v42 = vpack.c.bf16 %v576_v41, %v575_v40 }
  0x96   : > { %1111 = vmatprep.subr.bf16.mxu0 %v1110_v15  ;;  %1135 = vmatprep.subr.bf16.mxu1 %v1134_v45 }
  0x99   : > { %1113 = vmatpush3.bf16.msra.mxu0 %v1110_v15  ;;  %1137 = vmatpush3.bf16.msra.mxu1 %v1134_v45 }
  0x9a   : > { %1115 = vmatprep.subr.bf16.mxu0 %v1114_v18  ;;  %1139 = vmatprep.subr.bf16.mxu1 %v1138_v54 }
  0x9d   : > { %1117 = vmatpush3.bf16.msra.mxu0 %v1114_v18  ;;  %1141 = vmatpush3.bf16.msra.mxu1 %v1138_v54 }
  0x9e   : > { %1119 = vmatprep.subr.bf16.mxu0 %v1118_v21  ;;  %1143 = vmatprep.subr.bf16.mxu1 %v1142_v57 }
  0xa1   : > { %1121 = vmatpush3.bf16.msra.mxu0 %v1118_v21  ;;  %1145 = vmatpush3.bf16.msra.mxu1 %v1142_v57 }
  0xa2   : > { %1123 = vmatprep.subr.bf16.mxu0 %v1122_v24  ;;  %1147 = vmatprep.subr.bf16.mxu1 %v1146_v60 }
  0xa5   : > { %1125 = vmatpush3.bf16.msra.mxu0 %v1122_v24  ;;  %1149 = vmatpush3.bf16.msra.mxu1 %v1146_v60  ;;  %v911_v60 = vld [vmem:[%s1890_s4] ss:$0 sm:$0xff] }
  0xa6   : > { %1159 = vmatprep.subr.bf16.mxu0 %v1158_v50  ;;  %1151 = vmatprep.subr.bf16.mxu1 %v1150_v63 }
  0xa8   : > { %1013 = vmatmul.mubr.f32.vlgmr.msra.gmra.mrb[0].mxu0 %v1769_v25 }
  0xa9   : > { %1015 = vmatprep.mubr.f32.mxu0 %v1772_v26  ;;  %1161 = vmatpush3.bf16.msra.mxu0 %v1158_v50 }
  0xaa   : > { %1163 = vmatprep.subr.bf16.mxu0 %v1162_v53  ;;  %1153 = vmatpush3.bf16.msra.mxu1 %v1150_v63 }
  0xab   : > { %1155 = vmatprep.subr.bf16.mxu1 %v1154_v2 }
  0xac   : > { %1016 = vmatmul.mubr.f32.gmra.mrb[2].mxu0 %v1777_v27 }
  0xad   : > { %1165 = vmatpush3.bf16.msra.mxu0 %v1162_v53 }
  0xae   : > { %1157 = vmatpush3.bf16.msra.mxu1 %v1154_v2 }
  0xaf   : > { %1190 = vmatprep.subr.bf16.mxu1 %v1158_v50 }
  0xb1   : > { %1051 = vmatmul.mubr.f32.vlgmr.msra.gmra.mrb[0].mxu1 %v1769_v25  ;;  %v565_v25 = vld [vmem:[#allocation7 + $0x20] sm:$0xff] }
  0xb2   : > { %1198 = vmatpush3.bf16.msra.mxu1 %v1158_v50  ;;  %1053 = vmatprep.mubr.f32.mxu1 %v1772_v26  ;;  %v566_v26 = vld [vmem:[#allocation7 + $0x28] sm:$0xff] }
  0xb3   : > { %1191 = vmatprep.subr.bf16.mxu1 %v1162_v53 }
  0xb5   : > { %1054 = vmatmul.mubr.f32.gmra.mrb[2].mxu1 %v1777_v27  ;;  %v1166_v27 = vpack.c.bf16 %v566_v26, %v565_v25 }
  0xb6   : > { %1199 = vmatpush3.bf16.msra.mxu1 %v1162_v53 }
  0xb7   : > { %1167 = vmatprep.subr.bf16.mxu0 %v1166_v27  ;;  %1192 = vmatprep.subr.bf16.mxu1 %v1166_v27 }
  0xb8   : > { %1169 = vmatpush3.bf16.msra.mxu0 %v1166_v27 }
  0xba   : > { %1200 = vmatpush3.bf16.msra.mxu1 %v1166_v27 }
 0x17b   : > { %v1014_v29 = vpop.f32.mrb[0].mxu0 }
 0x17c   : > { %v463_v30 = vpop.f32.mrb[1].mxu0  ;;  %v1786_v34 = vadd.f32 %v1014_v29, %v909_v28  ;;  %v568_v29 = vld [vmem:[#allocation7 + $0x38] sm:$0xff] }
 0x17d   : > { %v1783_v31 = vadd.f32 %v909_v28, %v463_v30 }
 0x17f   : > { %v1017_v32 = vpop.f32.mrb[2].mxu0  ;;  %485 = vadd.xlane.f32.xlu0 %v1783_v31 }
 0x180   : > { %v473_v33 = vpop.f32.mrb[3].mxu0  ;;  %v1792_v36 = vadd.f32 %v1017_v32, %v909_v28  ;;  %v570_v32 = vld [vmem:[#allocation7 + $0x48] sm:$0xff] }
 0x181   : > { %v1788_v35 = vadd.f32 %v909_v28, %v473_v33  ;;  %v567_v28 = vld [vmem:[#allocation7 + $0x30] sm:$0xff] }
 0x182   : > { %v1170_v30 = vpack.c.bf16 %v568_v29, %v567_v28 }
 0x183   : > { %489 = vadd.xlane.f32.xlu1 %v1788_v35  ;;  %487 = vadd.xlane.f32.xlu0 %v1786_v34 }
 0x184   : > { %1171 = vmatprep.subr.bf16.mxu0 %v1170_v30  ;;  %1193 = vmatprep.subr.bf16.mxu1 %v1170_v30  ;;  %v1052_v43 = vpop.f32.mrb[0].mxu1 }
 0x185   : > { %1173 = vmatpush3.bf16.msra.mxu0 %v1170_v30  ;;  %1201 = vmatpush3.bf16.msra.mxu1 %v1170_v30  ;;  %v659_v44 = vpop.f32.mrb[1].mxu1 }
 0x187   : > { %491 = vadd.xlane.f32.xlu1 %v1792_v36 }
 0x20c   : > { %v486_v5 = vpop.xlane.xlu0 %485 }
 0x20d   : > { %v493_v6 = vmul.f32 0.03125, %v486_v5 }
 0x20f   : > { %v497_v7 = vsub.f32 %v1783_v31, %v493_v6  ;;  %v569_v31 = vld [vmem:[#allocation7 + $0x40] sm:$0xff] }
 0x210   : > { %v490_v8 = vpop.xlane.xlu1 %489  ;;  %v488_v9 = vpop.xlane.xlu0 %487  ;;  %v1174_v33 = vpack.c.bf16 %v570_v32, %v569_v31 }
 0x211   : > { %v495_v10 = vmul.f32 0.03125, %v490_v8  ;;  %v494_v11 = vmul.f32 0.03125, %v488_v9  ;;  %v1800_v12 = vsel %vm484_vm0, %v497_v7, 0.0 }
 0x212   : > { %v507_v13 = vmul.f32 %v1800_v12, %v1800_v12  ;;  %1175 = vmatprep.subr.bf16.mxu0 %v1174_v33  ;;  %1194 = vmatprep.subr.bf16.mxu1 %v1174_v33 }
 0x213   : > { %v499_v14 = vsub.f32 %v1788_v35, %v495_v10  ;;  %v498_v15 = vsub.f32 %v1786_v34, %v494_v11  ;;  %1177 = vmatpush3.bf16.msra.mxu0 %v1174_v33  ;;  %v571_v34 = vld [vmem:[#allocation7 + $0x50] sm:$0xff]  ;;  %v572_v35 = vld [vmem:[#allocation7 + $0x58] sm:$0xff]  ;;  %1202 = vmatpush3.bf16.msra.mxu1 %v1174_v33 }
 0x214   : > { %v492_v16 = vpop.xlane.xlu1 %491  ;;  %511 = vadd.xlane.f32.xlu0 %v507_v13 }
 0x215   : > { %v496_v17 = vmul.f32 0.03125, %v492_v16  ;;  %v1807_v18 = vsel %vm484_vm0, %v499_v14, 0.0  ;;  %v1810_v19 = vsel %vm484_vm0, %v498_v15, 0.0  ;;  %v912_v16 = vld [vmem:[%s1893_s7] ss:$0 sm:$0xff] }
 0x216   : > { %v509_v20 = vmul.f32 %v1807_v18, %v1807_v18  ;;  %v508_v21 = vmul.f32 %v1810_v19, %v1810_v19 }
 0x217   : > { %v500_v22 = vsub.f32 %v1792_v36, %v496_v17  ;;  %v1178_v36 = vpack.c.bf16 %v572_v35, %v571_v34 }
 0x218   : > { %515 = vadd.xlane.f32.xlu0 %v509_v20  ;;  %513 = vadd.xlane.f32.xlu1 %v508_v21 }
 0x219   : > { %v1818_v23 = vsel %vm484_vm0, %v500_v22, 0.0  ;;  %1179 = vmatprep.subr.bf16.mxu0 %v1178_v36  ;;  %1195 = vmatprep.subr.bf16.mxu1 %v1178_v36 }
 0x21a   : > { %v510_v24 = vmul.f32 %v1818_v23, %v1818_v23  ;;  %1181 = vmatpush3.bf16.msra.mxu0 %v1178_v36  ;;  %1203 = vmatpush3.bf16.msra.mxu1 %v1178_v36 }
 0x21b   : > { %1183 = vmatprep.subr.bf16.mxu0 %v1182_v39  ;;  %1196 = vmatprep.subr.bf16.mxu1 %v1182_v39 }
 0x21c   : > { %517 = vadd.xlane.f32.xlu1 %v510_v24 }
 0x21e   : > { %1185 = vmatpush3.bf16.msra.mxu0 %v1182_v39  ;;  %1204 = vmatpush3.bf16.msra.mxu1 %v1182_v39 }
 0x21f   : > { %1187 = vmatprep.subr.bf16.mxu0 %v1186_v42  ;;  %1197 = vmatprep.subr.bf16.mxu1 %v1186_v42 }
 0x222   : > { %1189 = vmatpush3.bf16.msra.mxu0 %v1186_v42  ;;  %1205 = vmatpush3.bf16.msra.mxu1 %v1186_v42 }
 0x2a1   : > { %v512_v45 = vpop.xlane.xlu0 %511 }
 0x2a2   : > { %v519_v46 = vmul.f32 0.03125, %v512_v45 }
 0x2a4   : > { %v523_v47 = vadd.f32 1e-05, %v519_v46 }
 0x2a5   : > { %v514_v48 = vpop.xlane.xlu1 %513  ;;  %v516_v49 = vpop.xlane.xlu0 %515 }
 0x2a6   : > { %1291 = vrsqrt.f32 %v523_v47  ;;  %v520_v50 = vmul.f32 0.03125, %v514_v48  ;;  %v521_v51 = vmul.f32 0.03125, %v516_v49 }
 0x2a8   : > { %v524_v52 = vadd.f32 1e-05, %v520_v50  ;;  %v525_v53 = vadd.f32 1e-05, %v521_v51 }
 0x2a9   : > { %v518_v54 = vpop.xlane.xlu1 %517 }
 0x2aa   : > { %1293 = vrsqrt.f32 %v524_v52  ;;  %v522_v55 = vmul.f32 0.03125, %v518_v54 }
 0x2ab   : > { %1295 = vrsqrt.f32 %v525_v53 }
 0x2ac   : > { %v526_v56 = vadd.f32 1e-05, %v522_v55 }
 0x2ae   : > { %1297 = vrsqrt.f32 %v526_v56 }
 0x2b0   : > { %v1292_v57 = vpop.eup %1291 }
 0x2b1   : > { %v531_v59 = vmul.f32 %v1292_v57, %v1800_v12 }
 0x2b3   : > { %v542_v61 = vmul.f32 %v910_v58, %v531_v59 }
 0x2b4   : > { %v1294_v62 = vpop.eup %1293 }
 0x2b5   : > { %v1296_v63 = vpop.eup %1295  ;;  %v532_v0 = vmul.f32 %v1294_v62, %v1810_v19  ;;  %v553_v1 = vadd.f32 %v911_v60, %v542_v61 }
 0x2b6   : > { %v533_v2 = vmul.f32 %v1296_v63, %v1807_v18 }
 0x2b7   : > { %v557_v3 = vmax.f32 %v553_v1, 0.0  ;;  %v543_v4 = vmul.f32 %v910_v58, %v532_v0 }
 0x2b8   : > { %v1298_v5 = vpop.eup %1297  ;;  %v544_v6 = vmul.f32 %v910_v58, %v533_v2 }
 0x2b9   : > { %v534_v7 = vmul.f32 %v1298_v5, %v1818_v23  ;;  %1088 = vmatprep.mubr.f32.mxu0 %v557_v3  ;;  %v554_v8 = vadd.f32 %v911_v60, %v543_v4 }
 0x2ba   : > { %v555_v9 = vadd.f32 %v911_v60, %v544_v6 }
 0x2bb   : > { %v558_v10 = vmax.f32 %v554_v8, 0.0  ;;  %v545_v11 = vmul.f32 %v910_v58, %v534_v7 }
 0x2bc   : > { %v559_v12 = vmax.f32 %v555_v9, 0.0 }
 0x2bd   : > { %1089 = vmatmul.mubr.f32.vlgmr.msra.gmra.mrb[4].mxu0 %v558_v10  ;;  %v556_v13 = vadd.f32 %v911_v60, %v545_v11 }
 0x2be   : > { %1091 = vmatprep.mubr.f32.mxu1 %v559_v12 }
 0x2bf   : > { %v560_v14 = vmax.f32 %v556_v13, 0.0 }
 0x2c1   : > { %1092 = vmatmul.mubr.f32.vlgmr.msra.gmra.mrb[2].mxu1 %v560_v14 }
 0x390   : > { %v1090_v15 = vpop.f32.mrb[4].mxu0 }
 0x391   : > { %v750_v17 = vadd.f32 %v1090_v15, %v1052_v43  ;;  %v744_v18 = vpop.f32.mrb[5].mxu0 }
 0x392   : > { %v745_v19 = vadd.f32 %v744_v18, %v659_v44 }
 0x393   : > { %v771_v20 = vadd.f32 %v912_v16, %v750_v17 }
 0x394   : > { %v770_v21 = vadd.f32 %v912_v16, %v745_v19  ;;  %v1093_v22 = vpop.f32.mrb[2].mxu1 }
 0x395   : > { %775 = vst [vmem:[%s367_s25 + $0x8] sm:$0xff] %v771_v20  ;;  %v773_v23 = vadd.f32 %v1093_v22, %v912_v16  ;;  %v754_v24 = vpop.f32.mrb[3].mxu1 }
 0x396   : > { %774 = vst [vmem:[%s367_s25] sm:$0xff] %v770_v21  ;;  %v772_v25 = vadd.f32 %v912_v16, %v754_v24 }
 0x397   : > { %777 = vst [vmem:[%s367_s25 + $0x18] sm:$0xff] %v773_v23 }
 0x398   : > { %776 = vst [vmem:[%s367_s25 + $0x10] sm:$0xff] %v772_v25 }
 0x399   : > { %1426 = shalt.err (!%p1423_p4)
}
 0x39a   : > { %s1427_s17 = scalar_lea.hbm %s1843_s10, 512  ;;  %s1431_s24 = scalar_lea.hbm %s1894_s8, 4096 }
 0x39b   : > { %p1428_p9 = scmp.ne.s32.totalorder %s1843_s10, %s1427_s17  ;;  %p1432_p8 = scmp.lt.u32.totalorder %s1843_s10, %s1894_s8 }
 0x39c   : > { %p1433_p12 = scmp.lt.u32.totalorder %s1431_s24, %s1427_s17  ;;  %p1435_p0 = scmp.lt.u32.totalorder %s1427_s17, %s1843_s10 }
 0x39d   : > { %p1429_p13 = pnand %p1428_p9, %p1696_p5 }
 0x39e   : > { %p1434_p6 = por %p1433_p12, %p1432_p8 }
 0x39f   : > { %p1430_p10 = pneg %p1429_p13 }
 0x3a0   : > { %p1436_p3 = por %p1435_p0, %p1434_p6 }
 0x3a2   : > { %p1437_p7 = pnand %p1436_p3, %p1430_p10 }
 0x3a4   : > { %1440 = shalt.err (!%p1437_p7)
}
 0x3a5   : > { %s1496_s15 = smov 128   ;;  %s1497_s27 = smov 8  }
 0x3a6   : > { %1224 = dma.vmem_to_hbm [thread:$0]  (%p1696_p5), %s1838_s20, 512, %s1843_s10, %s779_s9, %s1496_s15, %s1496_s15, %s1497_s27  }
 0x3a7 PF: > { %s1916_s11 = sld [smem:[#allocation15_spill]]  ;;  %s1917_s13 = sld [smem:[#allocation16_spill]] }
 0x3a8   : > { %p1251_p11 = scmp.ge.s32.totalorder %s1487_s30, 2 }
 0x3ad   : > { %s807_s19 = sand.u32 1, %s1916_s11   ;;  %p1918_p1 = scmp.ne.s32.totalorder %s1917_s13, 0 }
 0x3ae   : > { %s808_s21 = scalar_lea.sflag [#allocation4], %s807_s19 }
 0x3af   : > { %p1241_p2 = pnand %p1251_p11, %p1918_p1 }
 0x3b1   : > { %1470 = dma.done.wait (!%p1241_p2), %s808_s21, 512  }
 0x3b2   : > { %1472 = vsyncadd (!%p1241_p2), %s808_s21, 4294966784  ;;  %p23_p4 = scmp.ge.s32.totalorder %s1682_s26, 10   ;;  %s1919_s27 = smov %s1479_s28 }
 0x3b3   : > { %s1920_s28 = smov %s1483_s29  ;;  %s1921_s29 = smov %s1692_s22 }
 0x3b4   : > { %s1922_s30 = smov %s1682_s26  ;;  %25 = sbr.rel (!%p23_p4) target bundleno = 7 (0x7), region = 109 }
 0x3bb   :  { %813 = vsyncpa [#allocation3], 1 }
 0x3bc   :  { %815 = vsyncpa [#allocation3 + $0x1], 1 }
 0x3bd   :  { %816 = vsyncpa [#allocation6], 1 }
 0x3be   :  { %817 = vsyncpa [#allocation9], 1 }
 0x3bf   :  { %818 = vsyncpa [#allocation4], 1 }
 0x3c0   :  { %820 = vsyncpa [#allocation4 + $0x1], 1 }

// kernel: tpu_custom_call.1
= control target key start
LH: loop header
LB: loop body
LE: loop exit
PB: predicated region body
PF: predicated region fallthrough
CT: control target
= control target key end

     0   :  { %13 = vsyncpa [#allocation3], 0  ;;  %s1886_s0 = inlined_call_operand.hbm [shape: f32[256,128], index: 0, kind: input, shape index: {}]   ;;  %s1887_s1 = inlined_call_operand.hbm [shape: f32[128,128], index: 1, kind: input, shape index: {}]   ;;  %s1888_s2 = inlined_call_operand.vmem [shape: f32[1,128], index: 2, kind: input, shape index: {}]   ;;  %s1889_s3 = inlined_call_operand.vmem [shape: f32[1,128], index: 3, kind: input, shape index: {}]   ;;  %s1890_s4 = inlined_call_operand.vmem [shape: f32[1,128], index: 4, kind: input, shape index: {}]   ;;  %s1891_s5 = inlined_call_operand.hbm [shape: f32[128,128], index: 5, kind: input, shape index: {}]   ;;  %s1892_s6 = inlined_call_operand.hbm [shape: f32[128,128], index: 6, kind: input, shape index: {}]   ;;  %s1893_s7 = inlined_call_operand.vmem [shape: f32[1,128], index: 7, kind: input, shape index: {}]   ;;  %s1894_s8 = inlined_call_operand.hbm [shape: f32[256,128], index: 8, kind: output, shape index: {}]  }
   0x1   :  { %15 = vsyncpa [#allocation3 + $0x1], 0 }
   0x2   :  { %16 = vsyncpa [#allocation6], 0 }
   0x3   :  { %17 = vsyncpa [#allocation9], 0 }
   0x4   :  { %18 = vsyncpa [#allocation4], 0 }
   0x5   :  { %20 = vsyncpa [#allocation4 + $0x1], 0  ;;  %s1543_s27 = smov 0   ;;  %s1545_s28 = smov 0  }
   0x6   :  { %s1547_s29 = smov 0   ;;  %s1549_s30 = smov 0  }
   0x7 LB: > { %1900 = sst [smem:[#allocation15_spill]] %s1475_s27  ;;  %s1564_s9 = sadd.s32 4294967295, %s1487_s30   ;;  %s1487_s30 = sphi %s1549_s30, %s1922_s30   ;;  %s1483_s29 = sphi %s1547_s29, %s1921_s29   ;;  %s1479_s28 = sphi %s1545_s28, %s1920_s28   ;;  %s1475_s27 = sphi %s1543_s27, %s1919_s27  }
   0x8   : > { %s894_s10 = sadd.s32 4294967294, %s1487_s30   ;;  %p46_p0 = scmp.ne.s32.totalorder %s1479_s28, %s1475_s27 }
   0x9   : > { %p1895_p1 = scmp.eq.s32.totalorder %s1564_s9, 0  ;;  %p223_p3 = scmp.eq.s32.totalorder %s894_s10, 7 }
   0xa   : > { %p895_p5 = scmp.ge.s32.totalorder %s1487_s30, 1  ;;  %p230_p7 = scmp.lt.s32.totalorder %s1487_s30, 9 }
   0xb   : > { %p1573_p4 = por %p1895_p1, %p46_p0  ;;  %p1578_p6 = por %p223_p3, %p46_p0 }
   0xc   : > { %p1583_p8 = pnand %p895_p5, %p230_p7  ;;  %s1489_s14 = smov [#allocation5]  }
   0xd   : > { %s1901_s11 = scalar_select %p1573_p4, 1, 0 }
   0xe   : > { %s1902_s12 = scalar_select %p1578_p6, 1, 0 }
   0xf   : > { %s1904_s13 = scalar_select %p1583_p8, 1, 0 }
  0x10   : > { %1903 = sst [smem:[#allocation16_spill]] %s1902_s12  ;;  %s242_s15 = sshll.u32 %s1489_s14, 4  ;;  %s1587_s15 = int_to_ptr.vmem [resolvable:$true] %s242_s15 }
  0x11   : > { %p1226_p9 = pneg %p1583_p8  ;;  %s1490_s17 = smov [#allocation7]  }
  0x12   : > { %s264_s18 = sshll.u32 %s1490_s17, 4  ;;  %s1491_s19 = smov [#allocation8]   ;;  %s1597_s18 = int_to_ptr.vmem [resolvable:$true] %s264_s18 }
  0x13   : > { %p1593_p10 = pnand %p1226_p9, %p1895_p1  ;;  %s1599_s20 = sshll.u32 %s1491_s19, 4  ;;  %s278_s20 = int_to_ptr.vmem [resolvable:$true] %s1599_s20 }
  0x14   : > { %s1299_s23 = scalar_lea.hbm %s1887_s1, 2048 }
  0x15   : > { %p1300_p11 = scmp.ne.s32.totalorder %s1887_s1, %s1299_s23  ;;  %p1609_p12 = pneg %p1593_p10 }
  0x16   : > { %p1306_p3 = scmp.lt.u32.totalorder %s1299_s23, %s1887_s1 }
  0x17   : > { %p1302_p13 = pnand %p1609_p12, %p1300_p11 }
  0x19   : > { %p1303_p0 = pneg %p1302_p13 }
  0x1b   : > { %p1308_p5 = pnand %p1306_p3, %p1303_p0 }
  0x1d   : > { %1311 = shalt.err (!%p1308_p5)
}
  0x1e   : > { %s1312_s17 = scalar_lea.vmem %s1587_s15, 2048  ;;  %p1320_p2 = scmp.lt.s32.totalorder %s1587_s15, %s1587_s15 }
  0x1f   : > { %p1313_p7 = scmp.ne.s32.totalorder %s1587_s15, %s1312_s17  ;;  %p1321_p6 = scmp.lt.s32.totalorder %s1312_s17, %s1312_s17 }
  0x21   : > { %p1315_p9 = pnand %p1313_p7, %p1609_p12  ;;  %p1322_p11 = por %p1321_p6, %p1320_p2 }
  0x23   : > { %p1316_p1 = pneg %p1315_p9 }
  0x25   : > { %p1323_p13 = pnand %p1322_p11, %p1316_p1 }
  0x27   : > { %1326 = shalt.err (!%p1323_p13)
}
  0x28   : > { %s1492_s19 = smov 128   ;;  %s1493_s21 = smov 8  }
  0x29   : > { %1229 = dma.hbm_to_vmem [thread:$0]  (!%p1593_p10), %s1887_s1, 2048, %s1587_s15, [#allocation6], %s1492_s19, %s1492_s19, %s1493_s21  }
  0x2a   : > { %s1327_s10 = scalar_lea.hbm %s1891_s5, 2048 }
  0x2b   : > { %p1328_p1 = scmp.ne.s32.totalorder %s1891_s5, %s1327_s10  ;;  %p1334_p0 = scmp.lt.u32.totalorder %s1327_s10, %s1891_s5 }
  0x2d   : > { %p1330_p2 = pnand %p1328_p1, %p1609_p12 }
  0x2f   : > { %p1331_p6 = pneg %p1330_p2 }
  0x31   : > { %p1336_p3 = pnand %p1334_p0, %p1331_p6 }
  0x33   : > { %1339 = shalt.err (!%p1336_p3)
}
  0x34   : > { %s1340_s15 = scalar_lea.vmem %s1597_s18, 2048  ;;  %p1348_p11 = scmp.lt.s32.totalorder %s1597_s18, %s1597_s18 }
  0x35   : > { %p1341_p5 = scmp.ne.s32.totalorder %s1597_s18, %s1340_s15  ;;  %p1349_p13 = scmp.lt.s32.totalorder %s1340_s15, %s1340_s15 }
  0x37   : > { %p1343_p7 = pnand %p1341_p5, %p1609_p12  ;;  %p1350_p1 = por %p1349_p13, %p1348_p11 }
  0x39   : > { %p1344_p9 = pneg %p1343_p7 }
  0x3b   : > { %p1351_p2 = pnand %p1350_p1, %p1344_p9 }
  0x3d   : > { %1354 = shalt.err (!%p1351_p2)
}
  0x3e   : > { %1232 = dma.hbm_to_vmem [thread:$0]  (!%p1593_p10), %s1891_s5, 2048, %s1597_s18, [#allocation6], %s1492_s19, %s1492_s19, %s1493_s21  }
  0x3f   : > { %s1355_s24 = scalar_lea.hbm %s1892_s6, 2048 }
  0x40   : > { %p1356_p6 = scmp.ne.s32.totalorder %s1892_s6, %s1355_s24  ;;  %p1362_p5 = scmp.lt.u32.totalorder %s1355_s24, %s1892_s6 }
  0x42   : > { %p1358_p0 = pnand %p1356_p6, %p1609_p12 }
  0x44   : > { %p1359_p3 = pneg %p1358_p0 }
  0x46   : > { %p1364_p7 = pnand %p1362_p5, %p1359_p3 }
  0x48   : > { %1367 = shalt.err (!%p1364_p7)
}
  0x49   : > { %s1368_s15 = scalar_lea.vmem %s278_s20, 2048  ;;  %p1376_p1 = scmp.lt.s32.totalorder %s278_s20, %s278_s20 }
  0x4a   : > { %p1369_p9 = scmp.ne.s32.totalorder %s278_s20, %s1368_s15  ;;  %p1377_p2 = scmp.lt.s32.totalorder %s1368_s15, %s1368_s15 }
  0x4c   : > { %p1371_p11 = pnand %p1369_p9, %p1609_p12  ;;  %p1378_p4 = por %p1377_p2, %p1376_p1 }
  0x4e   : > { %p1372_p13 = pneg %p1371_p11 }
  0x50   : > { %p1379_p8 = pnand %p1378_p4, %p1372_p13 }
  0x52   : > { %1382 = shalt.err (!%p1379_p8)
}
  0x53   : > { %1235 = dma.hbm_to_vmem [thread:$0]  (!%p1593_p10), %s1892_s6, 2048, %s278_s20, [#allocation9], %s1492_s19, %s1492_s19, %s1493_s21  }
  0x54   : > { %s1682_s26 = sadd.s32 1, %s1487_s30   ;;  %s33_s12 = sadd.s32 1, %s1483_s29 }
  0x55   : > { %s30_s16 = ssub.s32 %s1487_s30, %s1682_s26  ;;  %p40_p8 = scmp.ne.s32.totalorder %s1483_s29, %s1479_s28 }
  0x56   : > { %p31_p4 = scmp.eq.s32.totalorder %s30_s16, 0  ;;  %p41_p12 = scmp.eq.s32.totalorder %s1487_s30, 0 }
  0x57   : > { %p1247_p6 = scmp.lt.s32.totalorder %s1487_s30, 8  ;;  %p1907_p3 = scmp.eq.s32.totalorder %s1564_s9, 7 }
  0x58   : > { %s1692_s22 = scalar_select %p31_p4, %s1483_s29, %s33_s12  }
  0x59   : > { %p42_p0 = por %p41_p12, %p40_p8  ;;  %p1696_p5 = por %p1907_p3, %p40_p8 }
  0x5a   : > { %s294_s24 = sand.u32 1, %s1483_s29   ;;  %s918_s25 = sshll.u32 %s1487_s30, 9 }
  0x5b   : > { %s900_s20 = sshll.u32 %s294_s24, 5  ;;  %s1705_s17 = scalar_lea.hbm %s1886_s0, %s918_s25 }
  0x5c   : > { %s298_s15 = scalar_lea.vmem [#allocation2], %s900_s20  ;;  %p1707_p10 = pnand %p1247_p6, %p42_p0 }
  0x5d   : > { %s305_s18 = sshll.u32 %s298_s15, 4  ;;  %s1713_s16 = scalar_lea.sflag [#allocation3], %s294_s24  ;;  %s1711_s18 = int_to_ptr.vmem [resolvable:$true] %s305_s18 }
  0x5e   : > { %s1383_s12 = scalar_lea.hbm %s1705_s17, 512  ;;  %p1385_p9 = pneg %p1707_p10 }
  0x5f   : > { %p1384_p7 = scmp.ne.s32.totalorder %s1705_s17, %s1383_s12  ;;  %s1388_s10 = scalar_lea.hbm %s1886_s0, 4096 }
  0x60   : > { %p1389_p1 = scmp.lt.u32.totalorder %s1705_s17, %s1886_s0  ;;  %p1390_p2 = scmp.lt.u32.totalorder %s1388_s10, %s1383_s12 }
  0x61   : > { %p1386_p11 = pnand %p1385_p9, %p1384_p7  ;;  %p1392_p8 = scmp.lt.u32.totalorder %s1383_s12, %s1705_s17 }
  0x62   : > { %p1391_p4 = por %p1390_p2, %p1389_p1 }
  0x63   : > { %p1387_p13 = pneg %p1386_p11 }
  0x64   : > { %p1393_p12 = por %p1392_p8, %p1391_p4 }
  0x66   : > { %p1394_p6 = pnand %p1393_p12, %p1387_p13 }
  0x68   : > { %1397 = shalt.err (!%p1394_p6)
}
  0x69   : > { %s1398_s24 = scalar_lea.vmem %s1711_s18, 512  ;;  %s1494_s25 = smov [#allocation2]  }
  0x6a   : > { %p1399_p0 = scmp.ne.s32.totalorder %s1711_s18, %s1398_s24  ;;  %s1403_s20 = sshll.u32 %s1494_s25, 4  ;;  %s1404_s20 = int_to_ptr.vmem [resolvable:$false] %s1403_s20 }
  0x6b   : > { %s1405_s14 = scalar_lea.vmem %s1404_s20, 1024  ;;  %p1406_p11 = scmp.lt.s32.totalorder %s1711_s18, %s1404_s20 }
  0x6c   : > { %p1401_p3 = pnand %p1399_p0, %p1385_p9  ;;  %p1407_p1 = scmp.lt.s32.totalorder %s1405_s14, %s1398_s24 }
  0x6e   : > { %p1402_p7 = pneg %p1401_p3  ;;  %p1408_p2 = por %p1407_p1, %p1406_p11 }
  0x70   : > { %p1409_p4 = pnand %p1408_p2, %p1402_p7 }
  0x72   : > { %1412 = shalt.err (!%p1409_p4)
}
  0x73   : > { %1239 = dma.hbm_to_vmem [thread:$0]  (!%p1707_p10), %s1705_s17, 512, %s1711_s18, %s1713_s16, %s1492_s19, %s1492_s19, %s1493_s21  }
  0x74   : > { %p1910_p9 = scmp.ne.s32.totalorder %s1904_s13, 0 }
  0x75   : > { %s1747_s12 = sand.u32 (!%p1910_p9), 1, %s1479_s28   ;;  %p1911_p13 = scmp.ne.s32.totalorder (!%p1910_p9), %s1901_s11, 0 }
  0x76   : > { %317 = sbr.rel (%p1910_p9) target bundleno = 935 (0x3a7), region = 52  ;;  %s904_s10 = sshll.u32 (!%p1910_p9), %s1747_s12, 5 }
  0x77   : > { %s320_s15 = scalar_lea.sflag (!%p1910_p9), [#allocation3], %s1747_s12  ;;  %s1753_s27 = scalar_lea.vmem (!%p1910_p9), [#allocation2], %s904_s10 }
  0x7d   : > { %1458 = dma.done.wait (%p1911_p13), %s320_s15, 512  }
  0x7e   : > { %1460 = vsyncadd (%p1911_p13), %s320_s15, 4294966784  ;;  %p1912_p10 = scmp.eq.s32.totalorder %s1564_s9, 0 }
  0x80   : > { %1462 = dma.done.wait (%p1912_p10), [#allocation6], 4096   ;;  %p1913_p8 = pmov %p1912_p10 }
  0x82   : > { %1464 = vsyncadd (%p1913_p8), [#allocation6], 4294963200  ;;  %p1914_p12 = pmov %p1913_p8 }
  0x83   : > { %p1915_p6 = pmov %p1913_p8 }
  0x84   : > { %1466 = dma.done.wait (%p1914_p12), [#allocation9], 2048  }
  0x85   : > { %1468 = vsyncadd (%p1915_p6), [#allocation9], 4294965248  ;;  %v374_v0 = vld [vmem:[#allocation5] sm:$0xff]  ;;  %v375_v1 = vld [vmem:[#allocation5 + $0x8] sm:$0xff]  ;;  %s367_s25 = scalar_lea.vmem [#allocation10], %s904_s10  ;;  %s919_s14 = sshll.u32 %s1564_s9, 9 }
  0x86   : > { %v376_v2 = vld [vmem:[#allocation5 + $0x10] sm:$0xff]  ;;  %v1094_v3 = vpack.c.bf16 %v375_v1, %v374_v0  ;;  %v377_v4 = vld [vmem:[#allocation5 + $0x18] sm:$0xff]  ;;  %v378_v6 = vld [vmem:[#allocation5 + $0x20] sm:$0xff]  ;;  %s792_s20 = sshll.u32 %s367_s25, 4  ;;  %s1843_s10 = scalar_lea.hbm %s1894_s8, %s919_s14  ;;  %s1838_s20 = int_to_ptr.vmem [resolvable:$true] %s792_s20 }
  0x87   : > { %v1098_v5 = vpack.c.bf16 %v377_v4, %v376_v2  ;;  %v379_v7 = vld [vmem:[#allocation5 + $0x28] sm:$0xff]  ;;  %v370_v9 = vld [vmem:[%s1753_s27] sm:$0xff]  ;;  %v380_v10 = vld [vmem:[#allocation5 + $0x30] sm:$0xff]  ;;  %s779_s9 = scalar_lea.sflag [#allocation4], %s1747_s12  ;;  %s1413_s11 = scalar_lea.vmem %s1838_s20, 512 }
  0x88   : > { %1095 = vmatprep.subr.bf16.mxu0 %v1094_v3  ;;  %v1102_v8 = vpack.c.bf16 %v379_v7, %v378_v6  ;;  %v381_v11 = vld [vmem:[#allocation5 + $0x38] sm:$0xff]  ;;  %1012 = vmatprep.mubr.f32.mxu0 %v370_v9  ;;  %v382_v13 = vld [vmem:[#allocation5 + $0x40] sm:$0xff]  ;;  %v383_v14 = vld [vmem:[#allocation5 + $0x48] sm:$0xff]  ;;  %p1414_p0 = scmp.ne.s32.totalorder %s1838_s20, %s1413_s11  ;;  %s1495_s13 = smov [#allocation10]  }
  0x89   : > { %1097 = vmatpush3.bf16.msra.mxu0 %v1094_v3  ;;  %1050 = vmatprep.mubr.f32.mxu1 %v370_v9  ;;  %v1106_v12 = vpack.c.bf16 %v381_v11, %v380_v10  ;;  %v1110_v15 = vpack.c.bf16 %v383_v14, %v382_v13  ;;  %v384_v16 = vld [vmem:[#allocation5 + $0x50] sm:$0xff]  ;;  %v385_v17 = vld [vmem:[#allocation5 + $0x58] sm:$0xff]  ;;  %v386_v19 = vld [vmem:[#allocation5 + $0x60] sm:$0xff]  ;;  %v482_v3 = vlaneseq  ;;  %s1417_s19 = sshll.u32 %s1495_s13, 4  ;;  %s1418_s19 = int_to_ptr.vmem [resolvable:$false] %s1417_s19 }
  0x8a   : > { %1099 = vmatprep.subr.bf16.mxu0 %v1098_v5  ;;  %v1114_v18 = vpack.c.bf16 %v385_v17, %v384_v16  ;;  %v387_v20 = vld [vmem:[#allocation5 + $0x68] sm:$0xff]  ;;  %v388_v22 = vld [vmem:[#allocation5 + $0x70] sm:$0xff]  ;;  %v389_v23 = vld [vmem:[#allocation5 + $0x78] sm:$0xff]  ;;  %p1415_p3 = pnand %p1414_p0, %p1696_p5  ;;  %s1419_s21 = scalar_lea.vmem %s1418_s19, 1024 }
  0x8b   : > { %v1118_v21 = vpack.c.bf16 %v387_v20, %v386_v19  ;;  %v1122_v24 = vpack.c.bf16 %v389_v23, %v388_v22  ;;  %v1769_v25 = vld [vmem:[%s1753_s27 + $0x8] sm:$0xff]  ;;  %v1772_v26 = vld [vmem:[%s1753_s27 + $0x10] sm:$0xff]  ;;  %v1777_v27 = vld [vmem:[%s1753_s27 + $0x18] sm:$0xff]  ;;  %v483_v4 = vand.u32 127, %v482_v3  ;;  %p1420_p11 = scmp.lt.s32.totalorder %s1838_s20, %s1418_s19  ;;  %p1421_p1 = scmp.lt.s32.totalorder %s1419_s21, %s1413_s11 }
  0x8c   : > { %v909_v28 = vld [vmem:[%s1888_s2] ss:$0 sm:$0xff]  ;;  %v578_v38 = vld [vmem:[#allocation8 + $0x8] sm:$0xff]  ;;  %v579_v39 = vld [vmem:[#allocation8 + $0x10] sm:$0xff]  ;;  %p1416_p7 = pneg %p1415_p3 }
  0x8d   : > { %1101 = vmatpush3.bf16.msra.mxu0 %v1098_v5  ;;  %v577_v37 = vld [vmem:[#allocation8] sm:$0xff]  ;;  %v580_v41 = vld [vmem:[#allocation8 + $0x18] sm:$0xff]  ;;  %v582_v44 = vld [vmem:[#allocation8 + $0x28] sm:$0xff]  ;;  %vm484_vm0 = vcmp.lt.s32.totalorder %v483_v4, 32  ;;  %p1422_p2 = por %p1421_p1, %p1420_p11 }
  0x8e   : > { %1103 = vmatprep.subr.bf16.mxu0 %v1102_v8  ;;  %v1126_v40 = vpack.c.bf16 %v578_v38, %v577_v37  ;;  %v1130_v42 = vpack.c.bf16 %v580_v41, %v579_v39  ;;  %v581_v43 = vld [vmem:[#allocation8 + $0x20] sm:$0xff]  ;;  %v583_v46 = vld [vmem:[#allocation8 + $0x30] sm:$0xff]  ;;  %v562_v48 = vld [vmem:[#allocation7 + $0x8] sm:$0xff] }
  0x8f   : > { %v1134_v45 = vpack.c.bf16 %v582_v44, %v581_v43  ;;  %v561_v47 = vld [vmem:[#allocation7] sm:$0xff]  ;;  %v584_v49 = vld [vmem:[#allocation8 + $0x38] sm:$0xff]  ;;  %v563_v51 = vld [vmem:[#allocation7 + $0x10] sm:$0xff]  ;;  %p1423_p4 = pnand %p1422_p2, %p1416_p7 }
  0x90   : > { %1127 = vmatprep.subr.bf16.mxu1 %v1126_v40  ;;  %v1158_v50 = vpack.c.bf16 %v562_v48, %v561_v47  ;;  %v564_v52 = vld [vmem:[#allocation7 + $0x18] sm:$0xff]  ;;  %v1138_v54 = vpack.c.bf16 %v584_v49, %v583_v46  ;;  %v585_v55 = vld [vmem:[#allocation8 + $0x40] sm:$0xff]  ;;  %v586_v56 = vld [vmem:[#allocation8 + $0x48] sm:$0xff] }
  0x91   : > { %1105 = vmatpush3.bf16.msra.mxu0 %v1102_v8  ;;  %1129 = vmatpush3.bf16.msra.mxu1 %v1126_v40  ;;  %v1162_v53 = vpack.c.bf16 %v564_v52, %v563_v51  ;;  %v1142_v57 = vpack.c.bf16 %v586_v56, %v585_v55  ;;  %v587_v58 = vld [vmem:[#allocation8 + $0x50] sm:$0xff]  ;;  %v588_v59 = vld [vmem:[#allocation8 + $0x58] sm:$0xff]  ;;  %v589_v61 = vld [vmem:[#allocation8 + $0x60] sm:$0xff] }
  0x92   : > { %1107 = vmatprep.subr.bf16.mxu0 %v1106_v12  ;;  %1131 = vmatprep.subr.bf16.mxu1 %v1130_v42  ;;  %v1146_v60 = vpack.c.bf16 %v588_v59, %v587_v58  ;;  %v590_v62 = vld [vmem:[#allocation8 + $0x68] sm:$0xff]  ;;  %v591_v0 = vld [vmem:[#allocation8 + $0x70] sm:$0xff]  ;;  %v592_v1 = vld [vmem:[#allocation8 + $0x78] sm:$0xff] }
  0x93   : > { %v1150_v63 = vpack.c.bf16 %v590_v62, %v589_v61  ;;  %v1154_v2 = vpack.c.bf16 %v592_v1, %v591_v0  ;;  %v573_v37 = vld [vmem:[#allocation7 + $0x60] sm:$0xff]  ;;  %v574_v38 = vld [vmem:[#allocation7 + $0x68] sm:$0xff]  ;;  %v575_v40 = vld [vmem:[#allocation7 + $0x70] sm:$0xff] }
  0x94   : > { %v1182_v39 = vpack.c.bf16 %v574_v38, %v573_v37  ;;  %v576_v41 = vld [vmem:[#allocation7 + $0x78] sm:$0xff]  ;;  %v910_v58 = vld [vmem:[%s1889_s3] ss:$0 sm:$0xff] }
  0x95   : > { %1109 = vmatpush3.bf16.msra.mxu0 %v1106_v12  ;;  %1133 = vmatpush3.bf16.msra.mxu1 %v1130_v42  ;;  %v1186_v42 = vpack.c.bf16 %v576_v41, %v575_v40 }
  0x96   : > { %1111 = vmatprep.subr.bf16.mxu0 %v1110_v15  ;;  %1135 = vmatprep.subr.bf16.mxu1 %v1134_v45 }
  0x99   : > { %1113 = vmatpush3.bf16.msra.mxu0 %v1110_v15  ;;  %1137 = vmatpush3.bf16.msra.mxu1 %v1134_v45 }
  0x9a   : > { %1115 = vmatprep.subr.bf16.mxu0 %v1114_v18  ;;  %1139 = vmatprep.subr.bf16.mxu1 %v1138_v54 }
  0x9d   : > { %1117 = vmatpush3.bf16.msra.mxu0 %v1114_v18  ;;  %1141 = vmatpush3.bf16.msra.mxu1 %v1138_v54 }
  0x9e   : > { %1119 = vmatprep.subr.bf16.mxu0 %v1118_v21  ;;  %1143 = vmatprep.subr.bf16.mxu1 %v1142_v57 }
  0xa1   : > { %1121 = vmatpush3.bf16.msra.mxu0 %v1118_v21  ;;  %1145 = vmatpush3.bf16.msra.mxu1 %v1142_v57 }
  0xa2   : > { %1123 = vmatprep.subr.bf16.mxu0 %v1122_v24  ;;  %1147 = vmatprep.subr.bf16.mxu1 %v1146_v60 }
  0xa5   : > { %1125 = vmatpush3.bf16.msra.mxu0 %v1122_v24  ;;  %1149 = vmatpush3.bf16.msra.mxu1 %v1146_v60  ;;  %v911_v60 = vld [vmem:[%s1890_s4] ss:$0 sm:$0xff] }
  0xa6   : > { %1159 = vmatprep.subr.bf16.mxu0 %v1158_v50  ;;  %1151 = vmatprep.subr.bf16.mxu1 %v1150_v63 }
  0xa8   : > { %1013 = vmatmul.mubr.f32.vlgmr.msra.gmra.mrb[0].mxu0 %v1769_v25 }
  0xa9   : > { %1015 = vmatprep.mubr.f32.mxu0 %v1772_v26  ;;  %1161 = vmatpush3.bf16.msra.mxu0 %v1158_v50 }
  0xaa   : > { %1163 = vmatprep.subr.bf16.mxu0 %v1162_v53  ;;  %1153 = vmatpush3.bf16.msra.mxu1 %v1150_v63 }
  0xab   : > { %1155 = vmatprep.subr.bf16.mxu1 %v1154_v2 }
  0xac   : > { %1016 = vmatmul.mubr.f32.gmra.mrb[2].mxu0 %v1777_v27 }
  0xad   : > { %1165 = vmatpush3.bf16.msra.mxu0 %v1162_v53 }
  0xae   : > { %1157 = vmatpush3.bf16.msra.mxu1 %v1154_v2 }
  0xaf   : > { %1190 = vmatprep.subr.bf16.mxu1 %v1158_v50 }
  0xb1   : > { %1051 = vmatmul.mubr.f32.vlgmr.msra.gmra.mrb[0].mxu1 %v1769_v25  ;;  %v565_v25 = vld [vmem:[#allocation7 + $0x20] sm:$0xff] }
  0xb2   : > { %1198 = vmatpush3.bf16.msra.mxu1 %v1158_v50  ;;  %1053 = vmatprep.mubr.f32.mxu1 %v1772_v26  ;;  %v566_v26 = vld [vmem:[#allocation7 + $0x28] sm:$0xff] }
  0xb3   : > { %1191 = vmatprep.subr.bf16.mxu1 %v1162_v53 }
  0xb5   : > { %1054 = vmatmul.mubr.f32.gmra.mrb[2].mxu1 %v1777_v27  ;;  %v1166_v27 = vpack.c.bf16 %v566_v26, %v565_v25 }
  0xb6   : > { %1199 = vmatpush3.bf16.msra.mxu1 %v1162_v53 }
  0xb7   : > { %1167 = vmatprep.subr.bf16.mxu0 %v1166_v27  ;;  %1192 = vmatprep.subr.bf16.mxu1 %v1166_v27 }
  0xb8   : > { %1169 = vmatpush3.bf16.msra.mxu0 %v1166_v27 }
  0xba   : > { %1200 = vmatpush3.bf16.msra.mxu1 %v1166_v27 }
 0x17b   : > { %v1014_v29 = vpop.f32.mrb[0].mxu0 }
 0x17c   : > { %v463_v30 = vpop.f32.mrb[1].mxu0  ;;  %v1786_v34 = vadd.f32 %v1014_v29, %v909_v28  ;;  %v568_v29 = vld [vmem:[#allocation7 + $0x38] sm:$0xff] }
 0x17d   : > { %v1783_v31 = vadd.f32 %v909_v28, %v463_v30 }
 0x17f   : > { %v1017_v32 = vpop.f32.mrb[2].mxu0  ;;  %485 = vadd.xlane.f32.xlu0 %v1783_v31 }
 0x180   : > { %v473_v33 = vpop.f32.mrb[3].mxu0  ;;  %v1792_v36 = vadd.f32 %v1017_v32, %v909_v28  ;;  %v570_v32 = vld [vmem:[#allocation7 + $0x48] sm:$0xff] }
 0x181   : > { %v1788_v35 = vadd.f32 %v909_v28, %v473_v33  ;;  %v567_v28 = vld [vmem:[#allocation7 + $0x30] sm:$0xff] }
 0x182   : > { %v1170_v30 = vpack.c.bf16 %v568_v29, %v567_v28 }
 0x183   : > { %489 = vadd.xlane.f32.xlu1 %v1788_v35  ;;  %487 = vadd.xlane.f32.xlu0 %v1786_v34 }
 0x184   : > { %1171 = vmatprep.subr.bf16.mxu0 %v1170_v30  ;;  %1193 = vmatprep.subr.bf16.mxu1 %v1170_v30  ;;  %v1052_v43 = vpop.f32.mrb[0].mxu1 }
 0x185   : > { %1173 = vmatpush3.bf16.msra.mxu0 %v1170_v30  ;;  %1201 = vmatpush3.bf16.msra.mxu1 %v1170_v30  ;;  %v659_v44 = vpop.f32.mrb[1].mxu1 }
 0x187   : > { %491 = vadd.xlane.f32.xlu1 %v1792_v36 }
 0x20c   : > { %v486_v5 = vpop.xlane.xlu0 %485 }
 0x20d   : > { %v493_v6 = vmul.f32 0.03125, %v486_v5 }
 0x20f   : > { %v497_v7 = vsub.f32 %v1783_v31, %v493_v6  ;;  %v569_v31 = vld [vmem:[#allocation7 + $0x40] sm:$0xff] }
 0x210   : > { %v490_v8 = vpop.xlane.xlu1 %489  ;;  %v488_v9 = vpop.xlane.xlu0 %487  ;;  %v1174_v33 = vpack.c.bf16 %v570_v32, %v569_v31 }
 0x211   : > { %v495_v10 = vmul.f32 0.03125, %v490_v8  ;;  %v494_v11 = vmul.f32 0.03125, %v488_v9  ;;  %v1800_v12 = vsel %vm484_vm0, %v497_v7, 0.0 }
 0x212   : > { %v507_v13 = vmul.f32 %v1800_v12, %v1800_v12  ;;  %1175 = vmatprep.subr.bf16.mxu0 %v1174_v33  ;;  %1194 = vmatprep.subr.bf16.mxu1 %v1174_v33 }
 0x213   : > { %v499_v14 = vsub.f32 %v1788_v35, %v495_v10  ;;  %v498_v15 = vsub.f32 %v1786_v34, %v494_v11  ;;  %1177 = vmatpush3.bf16.msra.mxu0 %v1174_v33  ;;  %v571_v34 = vld [vmem:[#allocation7 + $0x50] sm:$0xff]  ;;  %v572_v35 = vld [vmem:[#allocation7 + $0x58] sm:$0xff]  ;;  %1202 = vmatpush3.bf16.msra.mxu1 %v1174_v33 }
 0x214   : > { %v492_v16 = vpop.xlane.xlu1 %491  ;;  %511 = vadd.xlane.f32.xlu0 %v507_v13 }
 0x215   : > { %v496_v17 = vmul.f32 0.03125, %v492_v16  ;;  %v1807_v18 = vsel %vm484_vm0, %v499_v14, 0.0  ;;  %v1810_v19 = vsel %vm484_vm0, %v498_v15, 0.0  ;;  %v912_v16 = vld [vmem:[%s1893_s7] ss:$0 sm:$0xff] }
 0x216   : > { %v509_v20 = vmul.f32 %v1807_v18, %v1807_v18  ;;  %v508_v21 = vmul.f32 %v1810_v19, %v1810_v19 }
 0x217   : > { %v500_v22 = vsub.f32 %v1792_v36, %v496_v17  ;;  %v1178_v36 = vpack.c.bf16 %v572_v35, %v571_v34 }
 0x218   : > { %515 = vadd.xlane.f32.xlu0 %v509_v20  ;;  %513 = vadd.xlane.f32.xlu1 %v508_v21 }
 0x219   : > { %v1818_v23 = vsel %vm484_vm0, %v500_v22, 0.0  ;;  %1179 = vmatprep.subr.bf16.mxu0 %v1178_v36  ;;  %1195 = vmatprep.subr.bf16.mxu1 %v1178_v36 }
 0x21a   : > { %v510_v24 = vmul.f32 %v1818_v23, %v1818_v23  ;;  %1181 = vmatpush3.bf16.msra.mxu0 %v1178_v36  ;;  %1203 = vmatpush3.bf16.msra.mxu1 %v1178_v36 }
 0x21b   : > { %1183 = vmatprep.subr.bf16.mxu0 %v1182_v39  ;;  %1196 = vmatprep.subr.bf16.mxu1 %v1182_v39 }
 0x21c   : > { %517 = vadd.xlane.f32.xlu1 %v510_v24 }
 0x21e   : > { %1185 = vmatpush3.bf16.msra.mxu0 %v1182_v39  ;;  %1204 = vmatpush3.bf16.msra.mxu1 %v1182_v39 }
 0x21f   : > { %1187 = vmatprep.subr.bf16.mxu0 %v1186_v42  ;;  %1197 = vmatprep.subr.bf16.mxu1 %v1186_v42 }
 0x222   : > { %1189 = vmatpush3.bf16.msra.mxu0 %v1186_v42  ;;  %1205 = vmatpush3.bf16.msra.mxu1 %v1186_v42 }
 0x2a1   : > { %v512_v45 = vpop.xlane.xlu0 %511 }
 0x2a2   : > { %v519_v46 = vmul.f32 0.03125, %v512_v45 }
 0x2a4   : > { %v523_v47 = vadd.f32 1e-05, %v519_v46 }
 0x2a5   : > { %v514_v48 = vpop.xlane.xlu1 %513  ;;  %v516_v49 = vpop.xlane.xlu0 %515 }
 0x2a6   : > { %1291 = vrsqrt.f32 %v523_v47  ;;  %v520_v50 = vmul.f32 0.03125, %v514_v48  ;;  %v521_v51 = vmul.f32 0.03125, %v516_v49 }
 0x2a8   : > { %v524_v52 = vadd.f32 1e-05, %v520_v50  ;;  %v525_v53 = vadd.f32 1e-05, %v521_v51 }
 0x2a9   : > { %v518_v54 = vpop.xlane.xlu1 %517 }
 0x2aa   : > { %1293 = vrsqrt.f32 %v524_v52  ;;  %v522_v55 = vmul.f32 0.03125, %v518_v54 }
 0x2ab   : > { %1295 = vrsqrt.f32 %v525_v53 }
 0x2ac   : > { %v526_v56 = vadd.f32 1e-05, %v522_v55 }
 0x2ae   : > { %1297 = vrsqrt.f32 %v526_v56 }
 0x2b0   : > { %v1292_v57 = vpop.eup %1291 }
 0x2b1   : > { %v531_v59 = vmul.f32 %v1292_v57, %v1800_v12 }
 0x2b3   : > { %v542_v61 = vmul.f32 %v910_v58, %v531_v59 }
 0x2b4   : > { %v1294_v62 = vpop.eup %1293 }
 0x2b5   : > { %v1296_v63 = vpop.eup %1295  ;;  %v532_v0 = vmul.f32 %v1294_v62, %v1810_v19  ;;  %v553_v1 = vadd.f32 %v911_v60, %v542_v61 }
 0x2b6   : > { %v533_v2 = vmul.f32 %v1296_v63, %v1807_v18 }
 0x2b7   : > { %v557_v3 = vmax.f32 %v553_v1, 0.0  ;;  %v543_v4 = vmul.f32 %v910_v58, %v532_v0 }
 0x2b8   : > { %v1298_v5 = vpop.eup %1297  ;;  %v544_v6 = vmul.f32 %v910_v58, %v533_v2 }
 0x2b9   : > { %v534_v7 = vmul.f32 %v1298_v5, %v1818_v23  ;;  %1088 = vmatprep.mubr.f32.mxu0 %v557_v3  ;;  %v554_v8 = vadd.f32 %v911_v60, %v543_v4 }
 0x2ba   : > { %v555_v9 = vadd.f32 %v911_v60, %v544_v6 }
 0x2bb   : > { %v558_v10 = vmax.f32 %v554_v8, 0.0  ;;  %v545_v11 = vmul.f32 %v910_v58, %v534_v7 }
 0x2bc   : > { %v559_v12 = vmax.f32 %v555_v9, 0.0 }
 0x2bd   : > { %1089 = vmatmul.mubr.f32.vlgmr.msra.gmra.mrb[4].mxu0 %v558_v10  ;;  %v556_v13 = vadd.f32 %v911_v60, %v545_v11 }
 0x2be   : > { %1091 = vmatprep.mubr.f32.mxu1 %v559_v12 }
 0x2bf   : > { %v560_v14 = vmax.f32 %v556_v13, 0.0 }
 0x2c1   : > { %1092 = vmatmul.mubr.f32.vlgmr.msra.gmra.mrb[2].mxu1 %v560_v14 }
 0x390   : > { %v1090_v15 = vpop.f32.mrb[4].mxu0 }
 0x391   : > { %v750_v17 = vadd.f32 %v1090_v15, %v1052_v43  ;;  %v744_v18 = vpop.f32.mrb[5].mxu0 }
 0x392   : > { %v745_v19 = vadd.f32 %v744_v18, %v659_v44 }
 0x393   : > { %v771_v20 = vadd.f32 %v912_v16, %v750_v17 }
 0x394   : > { %v770_v21 = vadd.f32 %v912_v16, %v745_v19  ;;  %v1093_v22 = vpop.f32.mrb[2].mxu1 }
 0x395   : > { %775 = vst [vmem:[%s367_s25 + $0x8] sm:$0xff] %v771_v20  ;;  %v773_v23 = vadd.f32 %v1093_v22, %v912_v16  ;;  %v754_v24 = vpop.f32.mrb[3].mxu1 }
 0x396   : > { %774 = vst [vmem:[%s367_s25] sm:$0xff] %v770_v21  ;;  %v772_v25 = vadd.f32 %v912_v16, %v754_v24 }
 0x397   : > { %777 = vst [vmem:[%s367_s25 + $0x18] sm:$0xff] %v773_v23 }
 0x398   : > { %776 = vst [vmem:[%s367_s25 + $0x10] sm:$0xff] %v772_v25 }
 0x399   : > { %1426 = shalt.err (!%p1423_p4)
}
 0x39a   : > { %s1427_s17 = scalar_lea.hbm %s1843_s10, 512  ;;  %s1431_s24 = scalar_lea.hbm %s1894_s8, 4096 }
 0x39b   : > { %p1428_p9 = scmp.ne.s32.totalorder %s1843_s10, %s1427_s17  ;;  %p1432_p8 = scmp.lt.u32.totalorder %s1843_s10, %s1894_s8 }
 0x39c   : > { %p1433_p12 = scmp.lt.u32.totalorder %s1431_s24, %s1427_s17  ;;  %p1435_p0 = scmp.lt.u32.totalorder %s1427_s17, %s1843_s10 }
 0x39d   : > { %p1429_p13 = pnand %p1428_p9, %p1696_p5 }
 0x39e   : > { %p1434_p6 = por %p1433_p12, %p1432_p8 }
 0x39f   : > { %p1430_p10 = pneg %p1429_p13 }
 0x3a0   : > { %p1436_p3 = por %p1435_p0, %p1434_p6 }
 0x3a2   : > { %p1437_p7 = pnand %p1436_p3, %p1430_p10 }
 0x3a4   : > { %1440 = shalt.err (!%p1437_p7)
}
 0x3a5   : > { %s1496_s15 = smov 128   ;;  %s1497_s27 = smov 8  }
 0x3a6   : > { %1224 = dma.vmem_to_hbm [thread:$0]  (%p1696_p5), %s1838_s20, 512, %s1843_s10, %s779_s9, %s1496_s15, %s1496_s15, %s1497_s27  }
 0x3a7 PF: > { %s1916_s11 = sld [smem:[#allocation15_spill]]  ;;  %s1917_s13 = sld [smem:[#allocation16_spill]] }
 0x3a8   : > { %p1251_p11 = scmp.ge.s32.totalorder %s1487_s30, 2 }
 0x3ad   : > { %s807_s19 = sand.u32 1, %s1916_s11   ;;  %p1918_p1 = scmp.ne.s32.totalorder %s1917_s13, 0 }
 0x3ae   : > { %s808_s21 = scalar_lea.sflag [#allocation4], %s807_s19 }
 0x3af   : > { %p1241_p2 = pnand %p1251_p11, %p1918_p1 }
 0x3b1   : > { %1470 = dma.done.wait (!%p1241_p2), %s808_s21, 512  }
 0x3b2   : > { %1472 = vsyncadd (!%p1241_p2), %s808_s21, 4294966784  ;;  %p23_p4 = scmp.ge.s32.totalorder %s1682_s26, 10   ;;  %s1919_s27 = smov %s1479_s28 }
 0x3b3   : > { %s1920_s28 = smov %s1483_s29  ;;  %s1921_s29 = smov %s1692_s22 }
 0x3b4   : > { %s1922_s30 = smov %s1682_s26  ;;  %25 = sbr.rel (!%p23_p4) target bundleno = 7 (0x7), region = 109 }
 0x3bb   :  { %813 = vsyncpa [#allocation3], 1 }
 0x3bc   :  { %815 = vsyncpa [#allocation3 + $0x1], 1 }
 0x3bd   :  { %816 = vsyncpa [#allocation6], 1 }
 0x3be   :  { %817 = vsyncpa [#allocation9], 1 }
 0x3bf   :  { %818 = vsyncpa [#allocation4], 1 }
 0x3c0   :  { %820 = vsyncpa [#allocation4 + $0x1], 1 }

</bundles_post_ra>
